<compile_context>
chip_gen: v6e
topology: v6e:2x2x1
jax: 0.10.0
libtpu: 0.0.40
codegen_flags: <defaults>
</compile_context>

<pallas_src>
import numpy as np
import jax
import jax.numpy as jnp
from jax.experimental import pallas as pl
from jax.experimental.pallas import tpu as pltpu


def _round_up(n, m):
    return -(-n // m) * m


def _largest_divisor_at_most(n, cap):
    cap = max(1, min(n, cap))
    for d in range(cap, 0, -1):
        if n % d == 0:
            return d
    return 1


def make_vit_decoder(input_channels,
                     input_height,
                     input_width,
                     patch_height,
                     patch_width,
                     embed_dim,
                     use_cls_token=False,
                     batch_block=None,
                     step_vmem_budget=16 * 1024 * 1024):
    """Returns forward(embeddings, attention_weights=None, scaler_weight=None, scaler_bias=None).

    scaler_weight is the torch nn.Linear weight of shape (C*PH*PW, embed_dim); scaler_bias has
    shape (C*PH*PW,).  They are required iff embed_dim != C*PH*PW.
    """
    C, H, Wimg = input_channels, input_height, input_width
    PH, PW = patch_height, patch_width
    NPH, NPW = H // PH, Wimg // PW
    P = NPH * NPW                      # num_patches
    F = C * PH * PW                    # feature dim per patch, laid out [C, PH, PW]
    E = embed_dim
    S = P + 1 if use_cls_token else P
    CLS = 1 if use_cls_token else 0
    embed_scale = (E != F)
    # identity config: no scaler, no CLS -> read patch columns straight from the input block
    direct = (not embed_scale) and (not use_cls_token)

    def _pick_bb(B, per_batch_bytes):
        if batch_block is not None:
            assert B % batch_block == 0, "batch_block must divide the batch size"
            return batch_block
        cap = max(1, step_vmem_budget // max(per_batch_bytes, 1))
        return _largest_divisor_at_most(B, cap)

    def _compiler_params(vmem_need_bytes):
        lim = int(min(100 * 2**20, max(48 * 2**20, vmem_need_bytes + 8 * 2**20)))
        return pltpu.CompilerParams(dimension_semantics=("parallel",),
                                    vmem_limit_bytes=lim)

    # ------------------------- patch / image kernel -------------------------
    def _patch_call(embeddings, w_t, bias2d):
        B = embeddings.shape[0]
        itemsize = embeddings.dtype.itemsize
        out_pb = 4 * C * _round_up(NPH, 8) * _round_up(PH * Wimg, 128)
        if direct:
            in_pb = itemsize * NPH * _round_up(NPW, 8) * _round_up(F, 128)
            scratch_pb = 0
        else:
            in_pb = itemsize * _round_up(S, 8) * _round_up(E, 128)
            scratch_pb = 4 * NPH * _round_up(NPW, 8) * _round_up(F, 128)
        per_batch = 2 * (in_pb + out_pb) + scratch_pb       # x2: BlockSpec double buffering
        BB = _pick_bb(B, per_batch)

        def kernel(*refs):
            if direct:
                emb_ref, out_ref = refs
                src = emb_ref
            elif embed_scale:
                emb_ref, w_ref, b_ref, out_ref, patches_ref = refs
                src = patches_ref
            else:
                emb_ref, out_ref, patches_ref = refs
                src = patches_ref

            if not direct:
                # Stage (optionally scaled) patch embeddings into the (BB, NPH, NPW, F) scratch
                # so the unpatchify column reads below are contiguous slices.  Weight / bias
                # loads are hoisted; the CLS offset is folded into the scatter slice start.
                if embed_scale:
                    w = w_ref[...]                    # (E, F) bf16
                    bias = b_ref[...]                 # (1, F) f32
                for b in range(BB):
                    if embed_scale:
                        yb = jnp.dot(emb_ref[b].astype(jnp.bfloat16), w,
                                     preferred_element_type=jnp.float32) + bias   # (S, F) f32
                    else:
                        yb = emb_ref[b].astype(jnp.float32)                       # (S, F) f32
                    for i in range(NPH):
                        patches_ref[b, i, :, :] = yb[CLS + i * NPW: CLS + (i + 1) * NPW, :]

            # Unpatchify.  For each channel c: load the NPW patch-column slabs once (hoisted
            # out of the intra-patch-row loop), slice the PW-lane windows for every row phase
            # from those in-register values, and emit ONE lane-dense (BB, NPH, PH*W) store.
            # The output block (BB, C, NPH, PH*W) is a free row-major view of (BB, C, H, W).
            for c in range(C):
                base = c * PH * PW
                cols = [src[:, :, j, base: base + PH * PW] for j in range(NPW)]
                if direct:
                    cols = [col.astype(jnp.float32) for col in cols]
                pieces = []
                for r in range(PH):
                    lo = r * PW
                    for j in range(NPW):
                        pieces.append(cols[j][..., lo: lo + PW])      # (BB, NPH, PW)
                out_ref[:, c, :, :] = jnp.concatenate(pieces, axis=-1)  # (BB, NPH, PH*W)

        if direct:
            emb4 = embeddings.reshape(B, NPH, NPW, F)     # free (metadata-only) reshape
            in_specs = [pl.BlockSpec((BB, NPH, NPW, F), lambda b: (b, 0, 0, 0))]
            args = [emb4]
            scratch = []
        else:
            in_specs = [pl.BlockSpec((BB, S, E), lambda b: (b, 0, 0))]
            args = [embeddings]
            if embed_scale:
                in_specs += [pl.BlockSpec((E, F), lambda b: (0, 0)),
                             pl.BlockSpec((1, F), lambda b: (0, 0))]
                args += [w_t, bias2d]
            scratch = [pltpu.VMEM((BB, NPH, NPW, F), jnp.float32)]

        out4 = pl.pallas_call(
            kernel,
            out_shape=jax.ShapeDtypeStruct((B, C, NPH, PH * Wimg), jnp.float32),
            grid_spec=pltpu.PrefetchScalarGridSpec(
                num_scalar_prefetch=0,
                grid=(B // BB,),
                in_specs=in_specs,
                out_specs=pl.BlockSpec((BB, C, NPH, PH * Wimg),
                                       lambda b: (b, 0, 0, 0)),
                scratch_shapes=scratch,
            ),
            compiler_params=_compiler_params(BB * per_batch),
        )(*args)
        return out4.reshape(B, C, H, Wimg)                # free (metadata-only) reshape

    # ------------------------- attention-map kernel -------------------------
    def _attn_call(attention_weights):
        B, SA, SA2 = attention_weights.shape
        assert SA == SA2 and SA == P + 1, \
            f"attention_weights must be (B, {P + 1}, {P + 1}), got {attention_weights.shape}"
        SROWS = SA if SA < 8 else 8                       # only block 0 (the CLS row) is DMA'd
        itemsize = attention_weights.dtype.itemsize
        in_pb = itemsize * _round_up(SROWS, 8) * _round_up(SA, 128)
        out_pb = 4 * NPH * _round_up(PH, 8) * _round_up(Wimg, 128)
        per_batch = 2 * (in_pb + out_pb)
        BB = _pick_bb(B, per_batch)

        def kernel(attn_ref, out_ref):
            # CLS attention over the P patches, scaled by num_patches (ViTDecoder).
            vals = attn_ref[:, 0, 1:1 + P].astype(jnp.float32) * float(P)     # (BB, P)
            for i in range(NPH):
                vi = vals[:, i * NPW:(i + 1) * NPW]                           # (BB, NPW)
                row = jnp.concatenate(
                    [jnp.broadcast_to(vi[:, j:j + 1], (BB, PW)) for j in range(NPW)],
                    axis=-1)                                                  # (BB, W)
                out_ref[:, i, :, :] = jnp.broadcast_to(row[:, None, :], (BB, PH, Wimg))

        out4 = pl.pallas_call(
            kernel,
            out_shape=jax.ShapeDtypeStruct((B, NPH, PH, Wimg), jnp.float32),
            grid_spec=pltpu.PrefetchScalarGridSpec(
                num_scalar_prefetch=0,
                grid=(B // BB,),
                in_specs=[pl.BlockSpec((BB, SROWS, SA), lambda b: (b, 0, 0))],
                out_specs=pl.BlockSpec((BB, NPH, PH, Wimg), lambda b: (b, 0, 0, 0)),
                scratch_shapes=[],
            ),
            compiler_params=_compiler_params(BB * per_batch),
        )(attention_weights)
        return out4.reshape(B, 1, H, Wimg)                # free reshape to (B, 1, H, W)

    # ------------------------------ forward ---------------------------------
    def forward(embeddings, attention_weights=None, scaler_weight=None, scaler_bias=None):
        embeddings = jnp.asarray(embeddings)
        assert embeddings.ndim == 3 and embeddings.shape[1] == S and embeddings.shape[2] == E, \
            f"expected embeddings of shape (B, {S}, {E}), got {embeddings.shape}"
        if embed_scale:
            assert scaler_weight is not None and scaler_bias is not None, \
                "embed_dim != C*patch_h*patch_w requires scaler_weight / scaler_bias"
            # bf16 operands for the MXU; f32 accumulation via preferred_element_type.
            w_t = jnp.asarray(scaler_weight).astype(jnp.bfloat16).T       # (E, F)
            b2d = jnp.asarray(scaler_bias, jnp.float32).reshape(1, F)
        else:
            w_t, b2d = None, None
        image = _patch_call(embeddings, w_t, b2d)
        if use_cls_token:
            attention_map = _attn_call(jnp.asarray(attention_weights))
        else:
            attention_map = None
        return image, attention_map

    return forward


if __name__ == "__main__":
    key = jax.random.PRNGKey(0)
    kA, kB_emb, kB_attn, kB_w, kB_b, kC_emb, kC_attn = jax.random.split(key, 7)

    B, C, H, W, PH, PW = 2, 4, 16, 16, 4, 4
    NPH, NPW = H // PH, W // PW
    P, F = NPH * NPW, C * PH * PW

    def unpatchify_ref(x):           # x: (B, P, F) -> (B, C, H, W)
        return (np.asarray(x).reshape(B, NPH, NPW, C, PH, PW)
                .transpose(0, 3, 1, 4, 2, 5).reshape(B, C, H, W))

    # -------- config A: no CLS token, embed_dim == C*PH*PW (direct / no scaler) --------
    embA = jax.random.normal(kA, (B, P, F), dtype=jnp.float32)
    decoderA = make_vit_decoder(C, H, W, PH, PW, embed_dim=F, use_cls_token=False)
    imgA, amapA = decoderA(embA, None)
    imgA = jax.block_until_ready(imgA)
    np.testing.assert_allclose(np.asarray(imgA), unpatchify_ref(embA), rtol=1e-6, atol=1e-6)
    assert amapA is None
    assert imgA.shape == (B, C, H, W) and imgA.dtype == jnp.float32

    # -------- config B: CLS token + linear scaler (embed_dim != C*PH*PW) --------
    E = 32
    S = P + 1

    def bf16_round(x):   # keep scaler operands on the bf16 grid so MXU products are exact
        return x.astype(jnp.bfloat16).astype(jnp.float32)

    embB = bf16_round(jax.random.normal(kB_emb, (B, S, E), dtype=jnp.float32))
    attnB = jax.nn.softmax(jax.random.normal(kB_attn, (B, S, S), dtype=jnp.float32), axis=-1)
    w = bf16_round(0.1 * jax.random.normal(kB_w, (F, E), dtype=jnp.float32))   # torch Linear (out, in)
    bvec = bf16_round(0.1 * jax.random.normal(kB_b, (F,), dtype=jnp.float32))

    decoderB = make_vit_decoder(C, H, W, PH, PW, embed_dim=E, use_cls_token=True)
    imgB, amapB = decoderB(embB, attnB, scaler_weight=w, scaler_bias=bvec)
    imgB, amapB = jax.block_until_ready((imgB, amapB))

    scaled = np.asarray(embB) @ np.asarray(w).T + np.asarray(bvec)             # (B, S, F)
    np.testing.assert_allclose(np.asarray(imgB), unpatchify_ref(scaled[:, 1:, :]),
                               rtol=1e-4, atol=1e-4)
    cls_att = np.asarray(attnB)[:, 0, 1:]
    grid_ref = cls_att.reshape(B, NPH, NPW)
    amap_ref = np.repeat(np.repeat(grid_ref, PH, axis=1), PW, axis=2)[:, None, :, :] * P
    np.testing.assert_allclose(np.asarray(amapB), amap_ref, rtol=1e-5, atol=1e-6)
    assert imgB.shape == (B, C, H, W) and amapB.shape == (B, 1, H, W)

    # -------- config C: CLS token, no scaler (embed_dim == C*PH*PW) --------
    embC = jax.random.normal(kC_emb, (B, P + 1, F), dtype=jnp.float32)
    attnC = jax.nn.softmax(jax.random.normal(kC_attn, (B, P + 1, P + 1), dtype=jnp.float32), axis=-1)
    decoderC = make_vit_decoder(C, H, W, PH, PW, embed_dim=F, use_cls_token=True)
    imgC, amapC = decoderC(embC, attnC)
    imgC, amapC = jax.block_until_ready((imgC, amapC))
    np.testing.assert_allclose(np.asarray(imgC), unpatchify_ref(np.asarray(embC)[:, 1:, :]),
                               rtol=1e-6, atol=1e-6)
    cls_attC = np.asarray(attnC)[:, 0, 1:].reshape(B, NPH, NPW)
    amapC_ref = np.repeat(np.repeat(cls_attC, PH, axis=1), PW, axis=2)[:, None, :, :] * P
    np.testing.assert_allclose(np.asarray(amapC), amapC_ref, rtol=1e-5, atol=1e-6)

    print("KERNEL_OK")
</pallas_src>

<mosaic_0001>
module attributes {stable_mosaic.version = 11 : i64} {
  func.func @kernel(%arg0: i32, %arg1: memref<2x4x4x64xf32, #tpu.memory_space<vmem>>, %arg2: memref<2x4x4x64xf32, #tpu.memory_space<vmem>>) attributes {dimension_semantics = [#tpu.dimension_semantics<parallel>], iteration_bounds = array<i64: 1>, scalar_prefetch = 0 : i64, scratch_operands = 0 : i64, tpu.core_type = #tpu.core_type<tc>, window_params = [{transform_indices = @transform_0, window_bounds = array<i64: 2, 4, 4, 64>}, {transform_indices = @transform_1, window_bounds = array<i64: 2, 4, 4, 64>}]} {
    %c0 = arith.constant 0 : index
    %c0_0 = arith.constant 0 : index
    %c0_1 = arith.constant 0 : index
    %c0_2 = arith.constant 0 : index
    %0 = vector.load %arg1[%c0, %c0_0, %c0_1, %c0_2] : memref<2x4x4x64xf32, #tpu.memory_space<vmem>>, vector<2x4x1x16xf32>
    %1 = vector.shape_cast %0 : vector<2x4x1x16xf32> to vector<2x4x16xf32>
    %c0_3 = arith.constant 0 : index
    %c0_4 = arith.constant 0 : index
    %c1 = arith.constant 1 : index
    %c0_5 = arith.constant 0 : index
    %2 = vector.load %arg1[%c0_3, %c0_4, %c1, %c0_5] : memref<2x4x4x64xf32, #tpu.memory_space<vmem>>, vector<2x4x1x16xf32>
    %3 = vector.shape_cast %2 : vector<2x4x1x16xf32> to vector<2x4x16xf32>
    %c0_6 = arith.constant 0 : index
    %c0_7 = arith.constant 0 : index
    %c2 = arith.constant 2 : index
    %c0_8 = arith.constant 0 : index
    %4 = vector.load %arg1[%c0_6, %c0_7, %c2, %c0_8] : memref<2x4x4x64xf32, #tpu.memory_space<vmem>>, vector<2x4x1x16xf32>
    %5 = vector.shape_cast %4 : vector<2x4x1x16xf32> to vector<2x4x16xf32>
    %c0_9 = arith.constant 0 : index
    %c0_10 = arith.constant 0 : index
    %c3 = arith.constant 3 : index
    %c0_11 = arith.constant 0 : index
    %6 = vector.load %arg1[%c0_9, %c0_10, %c3, %c0_11] : memref<2x4x4x64xf32, #tpu.memory_space<vmem>>, vector<2x4x1x16xf32>
    %7 = vector.shape_cast %6 : vector<2x4x1x16xf32> to vector<2x4x16xf32>
    %8 = vector.extract_strided_slice %1 {offsets = [0, 0, 0], sizes = [2, 4, 4], strides = [1, 1, 1]} : vector<2x4x16xf32> to vector<2x4x4xf32>
    %9 = vector.extract_strided_slice %3 {offsets = [0, 0, 0], sizes = [2, 4, 4], strides = [1, 1, 1]} : vector<2x4x16xf32> to vector<2x4x4xf32>
    %10 = vector.extract_strided_slice %5 {offsets = [0, 0, 0], sizes = [2, 4, 4], strides = [1, 1, 1]} : vector<2x4x16xf32> to vector<2x4x4xf32>
    %11 = vector.extract_strided_slice %7 {offsets = [0, 0, 0], sizes = [2, 4, 4], strides = [1, 1, 1]} : vector<2x4x16xf32> to vector<2x4x4xf32>
    %12 = vector.extract_strided_slice %1 {offsets = [0, 0, 4], sizes = [2, 4, 4], strides = [1, 1, 1]} : vector<2x4x16xf32> to vector<2x4x4xf32>
    %13 = vector.extract_strided_slice %3 {offsets = [0, 0, 4], sizes = [2, 4, 4], strides = [1, 1, 1]} : vector<2x4x16xf32> to vector<2x4x4xf32>
    %14 = vector.extract_strided_slice %5 {offsets = [0, 0, 4], sizes = [2, 4, 4], strides = [1, 1, 1]} : vector<2x4x16xf32> to vector<2x4x4xf32>
    %15 = vector.extract_strided_slice %7 {offsets = [0, 0, 4], sizes = [2, 4, 4], strides = [1, 1, 1]} : vector<2x4x16xf32> to vector<2x4x4xf32>
    %16 = vector.extract_strided_slice %1 {offsets = [0, 0, 8], sizes = [2, 4, 4], strides = [1, 1, 1]} : vector<2x4x16xf32> to vector<2x4x4xf32>
    %17 = vector.extract_strided_slice %3 {offsets = [0, 0, 8], sizes = [2, 4, 4], strides = [1, 1, 1]} : vector<2x4x16xf32> to vector<2x4x4xf32>
    %18 = vector.extract_strided_slice %5 {offsets = [0, 0, 8], sizes = [2, 4, 4], strides = [1, 1, 1]} : vector<2x4x16xf32> to vector<2x4x4xf32>
    %19 = vector.extract_strided_slice %7 {offsets = [0, 0, 8], sizes = [2, 4, 4], strides = [1, 1, 1]} : vector<2x4x16xf32> to vector<2x4x4xf32>
    %20 = vector.extract_strided_slice %1 {offsets = [0, 0, 12], sizes = [2, 4, 4], strides = [1, 1, 1]} : vector<2x4x16xf32> to vector<2x4x4xf32>
    %21 = vector.extract_strided_slice %3 {offsets = [0, 0, 12], sizes = [2, 4, 4], strides = [1, 1, 1]} : vector<2x4x16xf32> to vector<2x4x4xf32>
    %22 = vector.extract_strided_slice %5 {offsets = [0, 0, 12], sizes = [2, 4, 4], strides = [1, 1, 1]} : vector<2x4x16xf32> to vector<2x4x4xf32>
    %23 = vector.extract_strided_slice %7 {offsets = [0, 0, 12], sizes = [2, 4, 4], strides = [1, 1, 1]} : vector<2x4x16xf32> to vector<2x4x4xf32>
    %24 = tpu.concatenate %8, %9, %10, %11, %12, %13, %14, %15, %16, %17, %18, %19, %20, %21, %22, %23 in 2 : vector<2x4x4xf32>, vector<2x4x4xf32>, vector<2x4x4xf32>, vector<2x4x4xf32>, vector<2x4x4xf32>, vector<2x4x4xf32>, vector<2x4x4xf32>, vector<2x4x4xf32>, vector<2x4x4xf32>, vector<2x4x4xf32>, vector<2x4x4xf32>, vector<2x4x4xf32>, vector<2x4x4xf32>, vector<2x4x4xf32>, vector<2x4x4xf32>, vector<2x4x4xf32> -> vector<2x4x64xf32>
    %c0_12 = arith.constant 0 : index
    %c0_13 = arith.constant 0 : index
    %c0_14 = arith.constant 0 : index
    %c0_15 = arith.constant 0 : index
    %25 = vector.load %arg2[%c0_12, %c0_13, %c0_14, %c0_15] : memref<2x4x4x64xf32, #tpu.memory_space<vmem>>, vector<2x1x4x64xf32>
    %26 = vector.shape_cast %25 : vector<2x1x4x64xf32> to vector<2x4x64xf32>
    %27 = vector.shape_cast %24 : vector<2x4x64xf32> to vector<2x1x4x64xf32>
    tpu.vector_store %arg2[%c0_12, %c0_13, %c0_14, %c0_15], %27 {strides = array<i32>} : memref<2x4x4x64xf32, #tpu.memory_space<vmem>>, vector<2x1x4x64xf32>,
    %c0_16 = arith.constant 0 : index
    %c0_17 = arith.constant 0 : index
    %c0_18 = arith.constant 0 : index
    %c16 = arith.constant 16 : index
    %28 = vector.load %arg1[%c0_16, %c0_17, %c0_18, %c16] : memref<2x4x4x64xf32, #tpu.memory_space<vmem>>, vector<2x4x1x16xf32>
    %29 = vector.shape_cast %28 : vector<2x4x1x16xf32> to vector<2x4x16xf32>
    %c0_19 = arith.constant 0 : index
    %c0_20 = arith.constant 0 : index
    %c1_21 = arith.constant 1 : index
    %c16_22 = arith.constant 16 : index
    %30 = vector.load %arg1[%c0_19, %c0_20, %c1_21, %c16_22] : memref<2x4x4x64xf32, #tpu.memory_space<vmem>>, vector<2x4x1x16xf32>
    %31 = vector.shape_cast %30 : vector<2x4x1x16xf32> to vector<2x4x16xf32>
    %c0_23 = arith.constant 0 : index
    %c0_24 = arith.constant 0 : index
    %c2_25 = arith.constant 2 : index
    %c16_26 = arith.constant 16 : index
    %32 = vector.load %arg1[%c0_23, %c0_24, %c2_25, %c16_26] : memref<2x4x4x64xf32, #tpu.memory_space<vmem>>, vector<2x4x1x16xf32>
    %33 = vector.shape_cast %32 : vector<2x4x1x16xf32> to vector<2x4x16xf32>
    %c0_27 = arith.constant 0 : index
    %c0_28 = arith.constant 0 : index
    %c3_29 = arith.constant 3 : index
    %c16_30 = arith.constant 16 : index
    %34 = vector.load %arg1[%c0_27, %c0_28, %c3_29, %c16_30] : memref<2x4x4x64xf32, #tpu.memory_space<vmem>>, vector<2x4x1x16xf32>
    %35 = vector.shape_cast %34 : vector<2x4x1x16xf32> to vector<2x4x16xf32>
    %36 = vector.extract_strided_slice %29 {offsets = [0, 0, 0], sizes = [2, 4, 4], strides = [1, 1, 1]} : vector<2x4x16xf32> to vector<2x4x4xf32>
    %37 = vector.extract_strided_slice %31 {offsets = [0, 0, 0], sizes = [2, 4, 4], strides = [1, 1, 1]} : vector<2x4x16xf32> to vector<2x4x4xf32>
    %38 = vector.extract_strided_slice %33 {offsets = [0, 0, 0], sizes = [2, 4, 4], strides = [1, 1, 1]} : vector<2x4x16xf32> to vector<2x4x4xf32>
    %39 = vector.extract_strided_slice %35 {offsets = [0, 0, 0], sizes = [2, 4, 4], strides = [1, 1, 1]} : vector<2x4x16xf32> to vector<2x4x4xf32>
    %40 = vector.extract_strided_slice %29 {offsets = [0, 0, 4], sizes = [2, 4, 4], strides = [1, 1, 1]} : vector<2x4x16xf32> to vector<2x4x4xf32>
    %41 = vector.extract_strided_slice %31 {offsets = [0, 0, 4], sizes = [2, 4, 4], strides = [1, 1, 1]} : vector<2x4x16xf32> to vector<2x4x4xf32>
    %42 = vector.extract_strided_slice %33 {offsets = [0, 0, 4], sizes = [2, 4, 4], strides = [1, 1, 1]} : vector<2x4x16xf32> to vector<2x4x4xf32>
    %43 = vector.extract_strided_slice %35 {offsets = [0, 0, 4], sizes = [2, 4, 4], strides = [1, 1, 1]} : vector<2x4x16xf32> to vector<2x4x4xf32>
    %44 = vector.extract_strided_slice %29 {offsets = [0, 0, 8], sizes = [2, 4, 4], strides = [1, 1, 1]} : vector<2x4x16xf32> to vector<2x4x4xf32>
    %45 = vector.extract_strided_slice %31 {offsets = [0, 0, 8], sizes = [2, 4, 4], strides = [1, 1, 1]} : vector<2x4x16xf32> to vector<2x4x4xf32>
    %46 = vector.extract_strided_slice %33 {offsets = [0, 0, 8], sizes = [2, 4, 4], strides = [1, 1, 1]} : vector<2x4x16xf32> to vector<2x4x4xf32>
    %47 = vector.extract_strided_slice %35 {offsets = [0, 0, 8], sizes = [2, 4, 4], strides = [1, 1, 1]} : vector<2x4x16xf32> to vector<2x4x4xf32>
    %48 = vector.extract_strided_slice %29 {offsets = [0, 0, 12], sizes = [2, 4, 4], strides = [1, 1, 1]} : vector<2x4x16xf32> to vector<2x4x4xf32>
    %49 = vector.extract_strided_slice %31 {offsets = [0, 0, 12], sizes = [2, 4, 4], strides = [1, 1, 1]} : vector<2x4x16xf32> to vector<2x4x4xf32>
    %50 = vector.extract_strided_slice %33 {offsets = [0, 0, 12], sizes = [2, 4, 4], strides = [1, 1, 1]} : vector<2x4x16xf32> to vector<2x4x4xf32>
    %51 = vector.extract_strided_slice %35 {offsets = [0, 0, 12], sizes = [2, 4, 4], strides = [1, 1, 1]} : vector<2x4x16xf32> to vector<2x4x4xf32>
    %52 = tpu.concatenate %36, %37, %38, %39, %40, %41, %42, %43, %44, %45, %46, %47, %48, %49, %50, %51 in 2 : vector<2x4x4xf32>, vector<2x4x4xf32>, vector<2x4x4xf32>, vector<2x4x4xf32>, vector<2x4x4xf32>, vector<2x4x4xf32>, vector<2x4x4xf32>, vector<2x4x4xf32>, vector<2x4x4xf32>, vector<2x4x4xf32>, vector<2x4x4xf32>, vector<2x4x4xf32>, vector<2x4x4xf32>, vector<2x4x4xf32>, vector<2x4x4xf32>, vector<2x4x4xf32> -> vector<2x4x64xf32>
    %c0_31 = arith.constant 0 : index
    %c1_32 = arith.constant 1 : index
    %c0_33 = arith.constant 0 : index
    %c0_34 = arith.constant 0 : index
    %53 = vector.load %arg2[%c0_31, %c1_32, %c0_33, %c0_34] : memref<2x4x4x64xf32, #tpu.memory_space<vmem>>, vector<2x1x4x64xf32>
    %54 = vector.shape_cast %53 : vector<2x1x4x64xf32> to vector<2x4x64xf32>
    %55 = vector.shape_cast %52 : vector<2x4x64xf32> to vector<2x1x4x64xf32>
    tpu.vector_store %arg2[%c0_31, %c1_32, %c0_33, %c0_34], %55 {strides = array<i32>} : memref<2x4x4x64xf32, #tpu.memory_space<vmem>>, vector<2x1x4x64xf32>,
    %c0_35 = arith.constant 0 : index
    %c0_36 = arith.constant 0 : index
    %c0_37 = arith.constant 0 : index
    %c32 = arith.constant 32 : index
    %56 = vector.load %arg1[%c0_35, %c0_36, %c0_37, %c32] : memref<2x4x4x64xf32, #tpu.memory_space<vmem>>, vector<2x4x1x16xf32>
    %57 = vector.shape_cast %56 : vector<2x4x1x16xf32> to vector<2x4x16xf32>
    %c0_38 = arith.constant 0 : index
    %c0_39 = arith.constant 0 : index
    %c1_40 = arith.constant 1 : index
    %c32_41 = arith.constant 32 : index
    %58 = vector.load %arg1[%c0_38, %c0_39, %c1_40, %c32_41] : memref<2x4x4x64xf32, #tpu.memory_space<vmem>>, vector<2x4x1x16xf32>
    %59 = vector.shape_cast %58 : vector<2x4x1x16xf32> to vector<2x4x16xf32>
    %c0_42 = arith.constant 0 : index
    %c0_43 = arith.constant 0 : index
    %c2_44 = arith.constant 2 : index
    %c32_45 = arith.constant 32 : index
    %60 = vector.load %arg1[%c0_42, %c0_43, %c2_44, %c32_45] : memref<2x4x4x64xf32, #tpu.memory_space<vmem>>, vector<2x4x1x16xf32>
    %61 = vector.shape_cast %60 : vector<2x4x1x16xf32> to vector<2x4x16xf32>
    %c0_46 = arith.constant 0 : index
    %c0_47 = arith.constant 0 : index
    %c3_48 = arith.constant 3 : index
    %c32_49 = arith.constant 32 : index
    %62 = vector.load %arg1[%c0_46, %c0_47, %c3_48, %c32_49] : memref<2x4x4x64xf32, #tpu.memory_space<vmem>>, vector<2x4x1x16xf32>
    %63 = vector.shape_cast %62 : vector<2x4x1x16xf32> to vector<2x4x16xf32>
    %64 = vector.extract_strided_slice %57 {offsets = [0, 0, 0], sizes = [2, 4, 4], strides = [1, 1, 1]} : vector<2x4x16xf32> to vector<2x4x4xf32>
    %65 = vector.extract_strided_slice %59 {offsets = [0, 0, 0], sizes = [2, 4, 4], strides = [1, 1, 1]} : vector<2x4x16xf32> to vector<2x4x4xf32>
    %66 = vector.extract_strided_slice %61 {offsets = [0, 0, 0], sizes = [2, 4, 4], strides = [1, 1, 1]} : vector<2x4x16xf32> to vector<2x4x4xf32>
    %67 = vector.extract_strided_slice %63 {offsets = [0, 0, 0], sizes = [2, 4, 4], strides = [1, 1, 1]} : vector<2x4x16xf32> to vector<2x4x4xf32>
    %68 = vector.extract_strided_slice %57 {offsets = [0, 0, 4], sizes = [2, 4, 4], strides = [1, 1, 1]} : vector<2x4x16xf32> to vector<2x4x4xf32>
    %69 = vector.extract_strided_slice %59 {offsets = [0, 0, 4], sizes = [2, 4, 4], strides = [1, 1, 1]} : vector<2x4x16xf32> to vector<2x4x4xf32>
    %70 = vector.extract_strided_slice %61 {offsets = [0, 0, 4], sizes = [2, 4, 4], strides = [1, 1, 1]} : vector<2x4x16xf32> to vector<2x4x4xf32>
    %71 = vector.extract_strided_slice %63 {offsets = [0, 0, 4], sizes = [2, 4, 4], strides = [1, 1, 1]} : vector<2x4x16xf32> to vector<2x4x4xf32>
    %72 = vector.extract_strided_slice %57 {offsets = [0, 0, 8], sizes = [2, 4, 4], strides = [1, 1, 1]} : vector<2x4x16xf32> to vector<2x4x4xf32>
    %73 = vector.extract_strided_slice %59 {offsets = [0, 0, 8], sizes = [2, 4, 4], strides = [1, 1, 1]} : vector<2x4x16xf32> to vector<2x4x4xf32>
    %74 = vector.extract_strided_slice %61 {offsets = [0, 0, 8], sizes = [2, 4, 4], strides = [1, 1, 1]} : vector<2x4x16xf32> to vector<2x4x4xf32>
    %75 = vector.extract_strided_slice %63 {offsets = [0, 0, 8], sizes = [2, 4, 4], strides = [1, 1, 1]} : vector<2x4x16xf32> to vector<2x4x4xf32>
    %76 = vector.extract_strided_slice %57 {offsets = [0, 0, 12], sizes = [2, 4, 4], strides = [1, 1, 1]} : vector<2x4x16xf32> to vector<2x4x4xf32>
    %77 = vector.extract_strided_slice %59 {offsets = [0, 0, 12], sizes = [2, 4, 4], strides = [1, 1, 1]} : vector<2x4x16xf32> to vector<2x4x4xf32>
    %78 = vector.extract_strided_slice %61 {offsets = [0, 0, 12], sizes = [2, 4, 4], strides = [1, 1, 1]} : vector<2x4x16xf32> to vector<2x4x4xf32>
    %79 = vector.extract_strided_slice %63 {offsets = [0, 0, 12], sizes = [2, 4, 4], strides = [1, 1, 1]} : vector<2x4x16xf32> to vector<2x4x4xf32>
    %80 = tpu.concatenate %64, %65, %66, %67, %68, %69, %70, %71, %72, %73, %74, %75, %76, %77, %78, %79 in 2 : vector<2x4x4xf32>, vector<2x4x4xf32>, vector<2x4x4xf32>, vector<2x4x4xf32>, vector<2x4x4xf32>, vector<2x4x4xf32>, vector<2x4x4xf32>, vector<2x4x4xf32>, vector<2x4x4xf32>, vector<2x4x4xf32>, vector<2x4x4xf32>, vector<2x4x4xf32>, vector<2x4x4xf32>, vector<2x4x4xf32>, vector<2x4x4xf32>, vector<2x4x4xf32> -> vector<2x4x64xf32>
    %c0_50 = arith.constant 0 : index
    %c2_51 = arith.constant 2 : index
    %c0_52 = arith.constant 0 : index
    %c0_53 = arith.constant 0 : index
    %81 = vector.load %arg2[%c0_50, %c2_51, %c0_52, %c0_53] : memref<2x4x4x64xf32, #tpu.memory_space<vmem>>, vector<2x1x4x64xf32>
    %82 = vector.shape_cast %81 : vector<2x1x4x64xf32> to vector<2x4x64xf32>
    %83 = vector.shape_cast %80 : vector<2x4x64xf32> to vector<2x1x4x64xf32>
    tpu.vector_store %arg2[%c0_50, %c2_51, %c0_52, %c0_53], %83 {strides = array<i32>} : memref<2x4x4x64xf32, #tpu.memory_space<vmem>>, vector<2x1x4x64xf32>,
    %c0_54 = arith.constant 0 : index
    %c0_55 = arith.constant 0 : index
    %c0_56 = arith.constant 0 : index
    %c48 = arith.constant 48 : index
    %84 = vector.load %arg1[%c0_54, %c0_55, %c0_56, %c48] : memref<2x4x4x64xf32, #tpu.memory_space<vmem>>, vector<2x4x1x16xf32>
    %85 = vector.shape_cast %84 : vector<2x4x1x16xf32> to vector<2x4x16xf32>
    %c0_57 = arith.constant 0 : index
    %c0_58 = arith.constant 0 : index
    %c1_59 = arith.constant 1 : index
    %c48_60 = arith.constant 48 : index
    %86 = vector.load %arg1[%c0_57, %c0_58, %c1_59, %c48_60] : memref<2x4x4x64xf32, #tpu.memory_space<vmem>>, vector<2x4x1x16xf32>
    %87 = vector.shape_cast %86 : vector<2x4x1x16xf32> to vector<2x4x16xf32>
    %c0_61 = arith.constant 0 : index
    %c0_62 = arith.constant 0 : index
    %c2_63 = arith.constant 2 : index
    %c48_64 = arith.constant 48 : index
    %88 = vector.load %arg1[%c0_61, %c0_62, %c2_63, %c48_64] : memref<2x4x4x64xf32, #tpu.memory_space<vmem>>, vector<2x4x1x16xf32>
    %89 = vector.shape_cast %88 : vector<2x4x1x16xf32> to vector<2x4x16xf32>
    %c0_65 = arith.constant 0 : index
    %c0_66 = arith.constant 0 : index
    %c3_67 = arith.constant 3 : index
    %c48_68 = arith.constant 48 : index
    %90 = vector.load %arg1[%c0_65, %c0_66, %c3_67, %c48_68] : memref<2x4x4x64xf32, #tpu.memory_space<vmem>>, vector<2x4x1x16xf32>
    %91 = vector.shape_cast %90 : vector<2x4x1x16xf32> to vector<2x4x16xf32>
    %92 = vector.extract_strided_slice %85 {offsets = [0, 0, 0], sizes = [2, 4, 4], strides = [1, 1, 1]} : vector<2x4x16xf32> to vector<2x4x4xf32>
    %93 = vector.extract_strided_slice %87 {offsets = [0, 0, 0], sizes = [2, 4, 4], strides = [1, 1, 1]} : vector<2x4x16xf32> to vector<2x4x4xf32>
    %94 = vector.extract_strided_slice %89 {offsets = [0, 0, 0], sizes = [2, 4, 4], strides = [1, 1, 1]} : vector<2x4x16xf32> to vector<2x4x4xf32>
    %95 = vector.extract_strided_slice %91 {offsets = [0, 0, 0], sizes = [2, 4, 4], strides = [1, 1, 1]} : vector<2x4x16xf32> to vector<2x4x4xf32>
    %96 = vector.extract_strided_slice %85 {offsets = [0, 0, 4], sizes = [2, 4, 4], strides = [1, 1, 1]} : vector<2x4x16xf32> to vector<2x4x4xf32>
    %97 = vector.extract_strided_slice %87 {offsets = [0, 0, 4], sizes = [2, 4, 4], strides = [1, 1, 1]} : vector<2x4x16xf32> to vector<2x4x4xf32>
    %98 = vector.extract_strided_slice %89 {offsets = [0, 0, 4], sizes = [2, 4, 4], strides = [1, 1, 1]} : vector<2x4x16xf32> to vector<2x4x4xf32>
    %99 = vector.extract_strided_slice %91 {offsets = [0, 0, 4], sizes = [2, 4, 4], strides = [1, 1, 1]} : vector<2x4x16xf32> to vector<2x4x4xf32>
    %100 = vector.extract_strided_slice %85 {offsets = [0, 0, 8], sizes = [2, 4, 4], strides = [1, 1, 1]} : vector<2x4x16xf32> to vector<2x4x4xf32>
    %101 = vector.extract_strided_slice %87 {offsets = [0, 0, 8], sizes = [2, 4, 4], strides = [1, 1, 1]} : vector<2x4x16xf32> to vector<2x4x4xf32>
    %102 = vector.extract_strided_slice %89 {offsets = [0, 0, 8], sizes = [2, 4, 4], strides = [1, 1, 1]} : vector<2x4x16xf32> to vector<2x4x4xf32>
    %103 = vector.extract_strided_slice %91 {offsets = [0, 0, 8], sizes = [2, 4, 4], strides = [1, 1, 1]} : vector<2x4x16xf32> to vector<2x4x4xf32>
    %104 = vector.extract_strided_slice %85 {offsets = [0, 0, 12], sizes = [2, 4, 4], strides = [1, 1, 1]} : vector<2x4x16xf32> to vector<2x4x4xf32>
    %105 = vector.extract_strided_slice %87 {offsets = [0, 0, 12], sizes = [2, 4, 4], strides = [1, 1, 1]} : vector<2x4x16xf32> to vector<2x4x4xf32>
    %106 = vector.extract_strided_slice %89 {offsets = [0, 0, 12], sizes = [2, 4, 4], strides = [1, 1, 1]} : vector<2x4x16xf32> to vector<2x4x4xf32>
    %107 = vector.extract_strided_slice %91 {offsets = [0, 0, 12], sizes = [2, 4, 4], strides = [1, 1, 1]} : vector<2x4x16xf32> to vector<2x4x4xf32>
    %108 = tpu.concatenate %92, %93, %94, %95, %96, %97, %98, %99, %100, %101, %102, %103, %104, %105, %106, %107 in 2 : vector<2x4x4xf32>, vector<2x4x4xf32>, vector<2x4x4xf32>, vector<2x4x4xf32>, vector<2x4x4xf32>, vector<2x4x4xf32>, vector<2x4x4xf32>, vector<2x4x4xf32>, vector<2x4x4xf32>, vector<2x4x4xf32>, vector<2x4x4xf32>, vector<2x4x4xf32>, vector<2x4x4xf32>, vector<2x4x4xf32>, vector<2x4x4xf32>, vector<2x4x4xf32> -> vector<2x4x64xf32>
    %c0_69 = arith.constant 0 : index
    %c3_70 = arith.constant 3 : index
    %c0_71 = arith.constant 0 : index
    %c0_72 = arith.constant 0 : index
    %109 = vector.load %arg2[%c0_69, %c3_70, %c0_71, %c0_72] : memref<2x4x4x64xf32, #tpu.memory_space<vmem>>, vector<2x1x4x64xf32>
    %110 = vector.shape_cast %109 : vector<2x1x4x64xf32> to vector<2x4x64xf32>
    %111 = vector.shape_cast %108 : vector<2x4x64xf32> to vector<2x1x4x64xf32>
    tpu.vector_store %arg2[%c0_69, %c3_70, %c0_71, %c0_72], %111 {strides = array<i32>} : memref<2x4x4x64xf32, #tpu.memory_space<vmem>>, vector<2x1x4x64xf32>,
    return
  }
  func.func @transform_0(%arg0: i32) -> (i32, i32, i32, i32) {
    %c0_i32 = arith.constant 0 : i32
    %c0_i32_0 = arith.constant 0 : i32
    %c0_i32_1 = arith.constant 0 : i32
    %c0_i32_2 = arith.constant 0 : i32
    return %arg0, %c0_i32, %c0_i32_0, %c0_i32_1 : i32, i32, i32, i32
  }
  func.func @transform_1(%arg0: i32) -> (i32, i32, i32, i32) {
    %c0_i32 = arith.constant 0 : i32
    %c0_i32_0 = arith.constant 0 : i32
    %c0_i32_1 = arith.constant 0 : i32
    %c0_i32_2 = arith.constant 0 : i32
    return %arg0, %c0_i32, %c0_i32_0, %c0_i32_1 : i32, i32, i32, i32
  }
}

</mosaic_0001>

<bundles_post_ra>
// kernel: tpu_custom_call.1
= control target key start
LH: loop header
LB: loop body
LE: loop exit
PB: predicated region body
PF: predicated region fallthrough
CT: control target
= control target key end

     0   :  { %6 = vsyncpa [#allocation3], 0  ;;  %s1660_s0 = inlined_call_operand.hbm [shape: f32[2,4,4,64], index: 0, kind: input, shape index: {}]   ;;  %s1661_s1 = inlined_call_operand.hbm [shape: f32[2,4,4,64], index: 1, kind: output, shape index: {}]  }
   0x1   :  { %7 = vsyncpa [#allocation4], 0  ;;  %s1077_s6 = smov [#allocation2]  }
   0x2   :  { %s13_s7 = sshll.u32 %s1077_s6, 4  ;;  %s14_s7 = int_to_ptr.vmem [resolvable:$true] %s13_s7 }
   0x3   :  { %s1041_s8 = scalar_lea.vmem %s14_s7, 512  ;;  %p1046_p1 = scmp.lt.s32.totalorder %s14_s7, %s14_s7 }
   0x4   :  { %p1042_p0 = scmp.ne.s32.totalorder %s14_s7, %s1041_s8  ;;  %p1047_p2 = scmp.lt.s32.totalorder %s1041_s8, %s1041_s8 }
   0x6   :  { %p1048_p3 = por %p1047_p2, %p1046_p1 }
   0x8   :  { %p1049_p4 = pnand %p1048_p3, %p1042_p0 }
   0xa   :  { %1052 = shalt.err (!%p1049_p4)
}
   0xb   :  { %s1078_s9 = smov 64   ;;  %s1079_s10 = smov 4  }
   0xc   :  { %19 = dma.hbm_to_vmem [thread:$0]  %s1660_s0, 512, %s14_s7, [#allocation3], %s1078_s9, %s1078_s9, %s1079_s10  }
   0xd   :  { %1073 = dma.done.wait [#allocation3], 512  }
   0xe   :  { %1074 = vsyncadd [#allocation3], 4294966784  ;;  %vm64_vm0 = vcmask 1041409   ;;  %vm67_vm1 = vcmask 1042434   ;;  %vm70_vm2 = vcmask 1043459   ;;  %s1080_s0 = smov 8  }
   0xf   :  { %v39_v0 = vld [vmem:[#allocation2 + $0x2] sm:$0x1]  ;;  %v40_v1 = vld [vmem:[#allocation2 + $0x6] sm:$0x1]  ;;  %v41_v2 = vld [vmem:[#allocation2 + $0xa] sm:$0x1] }
  0x10   :  { %v42_v3 = vld [vmem:[#allocation2 + $0xe] sm:$0x1]  ;;  %v114_v4 = vrot.slane %v40_v1, 7  ;;  %v116_v5 = vrot.slane %v41_v2, 6  ;;  %v31_v6 = vld [vmem:[#allocation2 + $0x1] sm:$0x1] }
  0x11   :  { %v118_v7 = vrot.slane %v42_v3, 5  ;;  %v32_v8 = vld [vmem:[#allocation2 + $0x5] sm:$0x1]  ;;  %v33_v9 = vld [vmem:[#allocation2 + $0x9] sm:$0x1]  ;;  %s1081_s13 = smov 12  }
  0x12   :  { %v115_v10 = vsel %vm64_vm0, %v114_v4, %v39_v0  ;;  %v34_v11 = vld [vmem:[#allocation2 + $0xd] sm:$0x1]  ;;  %v88_v12 = vrot.slane %v32_v8, 7  ;;  %v90_v13 = vrot.slane %v33_v9, 6  ;;  %v43_v14 = vld [vmem:[#allocation2 + $0x12] sm:$0x1] }
  0x13   :  { %v117_v15 = vsel %vm67_vm1, %v116_v5, %v115_v10  ;;  %v92_v16 = vrot.slane %v34_v11, 5  ;;  %v44_v17 = vld [vmem:[#allocation2 + $0x16] sm:$0x1]  ;;  %v45_v18 = vld [vmem:[#allocation2 + $0x1a] sm:$0x1]  ;;  %s1082_s14 = smov 16  }
  0x14   :  { %v1123_v19 = vsel %vm70_vm2, %v118_v7, %v117_v15  ;;  %v89_v20 = vsel %vm64_vm0, %v88_v12, %v31_v6  ;;  %v46_v21 = vld [vmem:[#allocation2 + $0x1e] sm:$0x1]  ;;  %v120_v22 = vrot.slane %v44_v17, 7  ;;  %v122_v23 = vrot.slane %v45_v18, 6  ;;  %v35_v24 = vld [vmem:[#allocation2 + $0x11] sm:$0x1] }
  0x15   :  { %126 = vrot.lane.b32.xlu1 %v1123_v19, %s1080_s0  ;;  %v91_v25 = vsel %vm67_vm1, %v90_v13, %v89_v20  ;;  %v124_v26 = vrot.slane %v46_v21, 5  ;;  %v36_v27 = vld [vmem:[#allocation2 + $0x15] sm:$0x1]  ;;  %v37_v28 = vld [vmem:[#allocation2 + $0x19] sm:$0x1]  ;;  %s1083_s15 = smov 20  }
  0x16   :  { %v1130_v29 = vsel %vm70_vm2, %v92_v16, %v91_v25  ;;  %v121_v30 = vsel %vm64_vm0, %v120_v22, %v43_v14  ;;  %v38_v31 = vld [vmem:[#allocation2 + $0x1d] sm:$0x1]  ;;  %v94_v32 = vrot.slane %v36_v27, 7  ;;  %v96_v33 = vrot.slane %v37_v28, 6  ;;  %v51_v34 = vld [vmem:[#allocation2 + $0x13] sm:$0x1] }
  0x17   :  { %100 = vrot.lane.b32.xlu0 %v1130_v29, %s1079_s10  ;;  %v123_v35 = vsel %vm67_vm1, %v122_v23, %v121_v30  ;;  %v98_v36 = vrot.slane %v38_v31, 5  ;;  %v52_v37 = vld [vmem:[#allocation2 + $0x17] sm:$0x1]  ;;  %v53_v38 = vld [vmem:[#allocation2 + $0x1b] sm:$0x1]  ;;  %s1084_s16 = smov 24  }
  0x18   :  { %v1137_v39 = vsel %vm70_vm2, %v124_v26, %v123_v35  ;;  %v95_v40 = vsel %vm64_vm0, %v94_v32, %v35_v24  ;;  %v54_v41 = vld [vmem:[#allocation2 + $0x1f] sm:$0x1]  ;;  %v146_v42 = vrot.slane %v52_v37, 7  ;;  %v148_v43 = vrot.slane %v53_v38, 6  ;;  %v47_v44 = vld [vmem:[#allocation2 + $0x3] sm:$0x1] }
  0x19   :  { %128 = vrot.lane.b32.xlu1 %v1137_v39, %s1080_s0  ;;  %v97_v45 = vsel %vm67_vm1, %v96_v33, %v95_v40  ;;  %v150_v46 = vrot.slane %v54_v41, 5  ;;  %v48_v47 = vld [vmem:[#allocation2 + $0x7] sm:$0x1]  ;;  %v49_v48 = vld [vmem:[#allocation2 + $0xb] sm:$0x1]  ;;  %s1085_s17 = smov 28  }
  0x1a   :  { %v1144_v49 = vsel %vm70_vm2, %v98_v36, %v97_v45  ;;  %v147_v50 = vsel %vm64_vm0, %v146_v42, %v51_v34  ;;  %v50_v51 = vld [vmem:[#allocation2 + $0xf] sm:$0x1]  ;;  %v140_v52 = vrot.slane %v48_v47, 7  ;;  %v142_v53 = vrot.slane %v49_v48, 6  ;;  %v27_v54 = vld [vmem:[#allocation2 + $0x10] sm:$0x1] }
  0x1b   :  { %102 = vrot.lane.b32.xlu0 %v1144_v49, %s1079_s10  ;;  %v149_v55 = vsel %vm67_vm1, %v148_v43, %v147_v50  ;;  %v144_v56 = vrot.slane %v50_v51, 5  ;;  %v28_v57 = vld [vmem:[#allocation2 + $0x14] sm:$0x1]  ;;  %v29_v58 = vld [vmem:[#allocation2 + $0x18] sm:$0x1]  ;;  %s1086_s18 = smov 32  }
  0x1c   :  { %v1151_v59 = vsel %vm70_vm2, %v150_v46, %v149_v55  ;;  %v141_v60 = vsel %vm64_vm0, %v140_v52, %v47_v44  ;;  %v30_v61 = vld [vmem:[#allocation2 + $0x1c] sm:$0x1]  ;;  %v72_v62 = vrot.slane %v28_v57, 7  ;;  %v74_v63 = vrot.slane %v29_v58, 6  ;;  %v23_v0 = vld [vmem:[#allocation2] sm:$0x1] }
  0x1d   :  { %154 = vrot.lane.b32.xlu1 %v1151_v59, %s1081_s13  ;;  %v143_v1 = vsel %vm67_vm1, %v142_v53, %v141_v60  ;;  %v76_v2 = vrot.slane %v30_v61, 5  ;;  %v24_v3 = vld [vmem:[#allocation2 + $0x4] sm:$0x1]  ;;  %v25_v4 = vld [vmem:[#allocation2 + $0x8] sm:$0x1]  ;;  %s1087_s19 = smov 36  }
  0x1e   :  { %v1158_v5 = vsel %vm70_vm2, %v144_v56, %v143_v1  ;;  %v73_v6 = vsel %vm64_vm0, %v72_v62, %v27_v54  ;;  %v26_v7 = vld [vmem:[#allocation2 + $0xc] sm:$0x1]  ;;  %v63_v8 = vrot.slane %v24_v3, 7  ;;  %v66_v9 = vrot.slane %v25_v4, 6  ;;  %v290_v16 = vld [vmem:[#allocation2 + $0x11] sm:$0x1] }
  0x1f   :  { %152 = vrot.lane.b32.xlu0 %v1158_v5, %s1081_s13  ;;  %v75_v10 = vsel %vm67_vm1, %v74_v63, %v73_v6  ;;  %v69_v11 = vrot.slane %v26_v7, 5  ;;  %v291_v17 = vld [vmem:[#allocation2 + $0x15] sm:$0x1]  ;;  %v292_v18 = vld [vmem:[#allocation2 + $0x19] sm:$0x1]  ;;  %s1088_s20 = smov 40  }
  0x20   :  { %v1165_v12 = vsel %vm70_vm2, %v76_v2, %v75_v10  ;;  %v65_v13 = vsel %vm64_vm0, %v63_v8, %v23_v0  ;;  %v293_v20 = vld [vmem:[#allocation2 + $0x1d] sm:$0x1]  ;;  %v350_v21 = vrot.slane %v291_v17, 7  ;;  %v352_v22 = vrot.slane %v292_v18, 6  ;;  %v286_v23 = vld [vmem:[#allocation2 + $0x1] sm:$0x1] }
  0x21   :  { %160 = vrot.lane.b32.xlu1 %v1165_v12, %s1081_s13  ;;  %v68_v14 = vsel %vm67_vm1, %v66_v9, %v65_v13  ;;  %v354_v24 = vrot.slane %v293_v20, 5  ;;  %v287_v25 = vld [vmem:[#allocation2 + $0x5] sm:$0x1]  ;;  %v288_v26 = vld [vmem:[#allocation2 + $0x9] sm:$0x1]  ;;  %s1089_s21 = smov 44  }
  0x22   :  { %v1172_v15 = vsel %vm70_vm2, %v69_v11, %v68_v14  ;;  %v351_v27 = vsel %vm64_vm0, %v350_v21, %v290_v16  ;;  %v289_v28 = vld [vmem:[#allocation2 + $0xd] sm:$0x1]  ;;  %v344_v30 = vrot.slane %v287_v25, 7  ;;  %v346_v31 = vrot.slane %v288_v26, 6  ;;  %v298_v32 = vld [vmem:[#allocation2 + $0x12] sm:$0x1] }
  0x23   :  { %158 = vrot.lane.b32.xlu0 %v1172_v15, %s1081_s13  ;;  %v353_v33 = vsel %vm67_vm1, %v352_v22, %v351_v27  ;;  %v348_v34 = vrot.slane %v289_v28, 5  ;;  %v299_v35 = vld [vmem:[#allocation2 + $0x16] sm:$0x1]  ;;  %v300_v36 = vld [vmem:[#allocation2 + $0x1a] sm:$0x1]  ;;  %s1090_s22 = smov 48  }
  0x24   :  { %v1183_v37 = vsel %vm70_vm2, %v354_v24, %v353_v33  ;;  %v345_v38 = vsel %vm64_vm0, %v344_v30, %v286_v23  ;;  %v301_v40 = vld [vmem:[#allocation2 + $0x1e] sm:$0x1]  ;;  %v376_v41 = vrot.slane %v299_v35, 7  ;;  %v378_v42 = vrot.slane %v300_v36, 6  ;;  %v294_v43 = vld [vmem:[#allocation2 + $0x2] sm:$0x1] }
  0x25   :  { %166 = vrot.lane.b32.xlu1 %v1144_v49, %s1082_s14  ;;  %v347_v44 = vsel %vm67_vm1, %v346_v31, %v345_v38  ;;  %v380_v45 = vrot.slane %v301_v40, 5  ;;  %v295_v46 = vld [vmem:[#allocation2 + $0x6] sm:$0x1]  ;;  %v296_v47 = vld [vmem:[#allocation2 + $0xa] sm:$0x1]  ;;  %s1091_s23 = smov 112  }
  0x26   :  { %v1190_v48 = vsel %vm70_vm2, %v348_v34, %v347_v44  ;;  %v377_v50 = vsel %vm64_vm0, %v376_v41, %v298_v32  ;;  %v297_v51 = vld [vmem:[#allocation2 + $0xe] sm:$0x1]  ;;  %v370_v52 = vrot.slane %v295_v46, 7  ;;  %v372_v53 = vrot.slane %v296_v47, 6  ;;  %v306_v54 = vld [vmem:[#allocation2 + $0x13] sm:$0x1] }
  0x27   :  { %164 = vrot.lane.b32.xlu0 %v1130_v29, %s1082_s14  ;;  %v379_v55 = vsel %vm67_vm1, %v378_v42, %v377_v50  ;;  %v374_v56 = vrot.slane %v297_v51, 5  ;;  %v307_v57 = vld [vmem:[#allocation2 + $0x17] sm:$0x1]  ;;  %v308_v58 = vld [vmem:[#allocation2 + $0x1b] sm:$0x1]  ;;  %s1092_s24 = smov 116  }
  0x28   :  { %v1197_v60 = vsel %vm70_vm2, %v380_v45, %v379_v55  ;;  %v371_v61 = vsel %vm64_vm0, %v370_v52, %v294_v43  ;;  %v309_v62 = vld [vmem:[#allocation2 + $0x1f] sm:$0x1]  ;;  %v402_v63 = vrot.slane %v307_v57, 7  ;;  %v404_v0 = vrot.slane %v308_v58, 6  ;;  %v302_v1 = vld [vmem:[#allocation2 + $0x3] sm:$0x1] }
  0x29   :  { %172 = vrot.lane.b32.xlu1 %v1137_v39, %s1083_s15  ;;  %v373_v2 = vsel %vm67_vm1, %v372_v53, %v371_v61  ;;  %v406_v3 = vrot.slane %v309_v62, 5  ;;  %v303_v4 = vld [vmem:[#allocation2 + $0x7] sm:$0x1]  ;;  %v304_v6 = vld [vmem:[#allocation2 + $0xb] sm:$0x1]  ;;  %s1093_s25 = smov 120  }
  0x2a   :  { %v1204_v7 = vsel %vm70_vm2, %v374_v56, %v373_v2  ;;  %v403_v8 = vsel %vm64_vm0, %v402_v63, %v306_v54  ;;  %v305_v9 = vld [vmem:[#allocation2 + $0xf] sm:$0x1]  ;;  %v396_v10 = vrot.slane %v303_v4, 7  ;;  %v398_v11 = vrot.slane %v304_v6, 6  ;;  %v519_v13 = vld [vmem:[#allocation2 + $0x10] sm:$0x1] }
  0x2b   :  { %170 = vrot.lane.b32.xlu0 %v1123_v19, %s1083_s15  ;;  %v405_v14 = vsel %vm67_vm1, %v404_v0, %v403_v8  ;;  %v400_v16 = vrot.slane %v305_v9, 5  ;;  %v520_v17 = vld [vmem:[#allocation2 + $0x14] sm:$0x1]  ;;  %v521_v18 = vld [vmem:[#allocation2 + $0x18] sm:$0x1]  ;;  %s1094_s26 = smov 124  }
  0x2c   :  { %v1211_v20 = vsel %vm70_vm2, %v406_v3, %v405_v14  ;;  %v397_v21 = vsel %vm64_vm0, %v396_v10, %v302_v1  ;;  %v522_v22 = vld [vmem:[#allocation2 + $0x1c] sm:$0x1]  ;;  %v561_v23 = vrot.slane %v520_v17, 7  ;;  %v563_v24 = vrot.slane %v521_v18, 6  ;;  %v515_v25 = vld [vmem:[#allocation2] sm:$0x1] }
  0x2d   :  { %178 = vrot.lane.b32.xlu1 %v1151_v59, %s1084_s16  ;;  %v399_v26 = vsel %vm67_vm1, %v398_v11, %v397_v21  ;;  %v565_v27 = vrot.slane %v522_v22, 5  ;;  %v516_v28 = vld [vmem:[#allocation2 + $0x4] sm:$0x1]  ;;  %v517_v30 = vld [vmem:[#allocation2 + $0x8] sm:$0x1]  ;;  %s1095_s27 = smov 96  }
  0x2e   :  { %v1218_v31 = vsel %vm70_vm2, %v400_v16, %v399_v26  ;;  %v562_v32 = vsel %vm64_vm0, %v561_v23, %v519_v13  ;;  %v518_v33 = vld [vmem:[#allocation2 + $0xc] sm:$0x1]  ;;  %v555_v34 = vrot.slane %v516_v28, 7  ;;  %v557_v35 = vrot.slane %v517_v30, 6  ;;  %v527_v36 = vld [vmem:[#allocation2 + $0x11] sm:$0x1] }
  0x2f   :  { %176 = vrot.lane.b32.xlu0 %v1158_v5, %s1084_s16  ;;  %v564_v38 = vsel %vm67_vm1, %v563_v24, %v562_v32  ;;  %v559_v40 = vrot.slane %v518_v33, 5  ;;  %v528_v41 = vld [vmem:[#allocation2 + $0x15] sm:$0x1]  ;;  %v529_v42 = vld [vmem:[#allocation2 + $0x19] sm:$0x1]  ;;  %s1096_s28 = smov 100  }
  0x30   :  { %v1225_v43 = vsel %vm70_vm2, %v565_v27, %v564_v38  ;;  %v556_v44 = vsel %vm64_vm0, %v555_v34, %v515_v25  ;;  %v530_v45 = vld [vmem:[#allocation2 + $0x1d] sm:$0x1]  ;;  %v587_v46 = vrot.slane %v528_v41, 7  ;;  %v589_v47 = vrot.slane %v529_v42, 6  ;;  %v523_v50 = vld [vmem:[#allocation2 + $0x1] sm:$0x1] }
  0x31   :  { %184 = vrot.lane.b32.xlu1 %v1165_v12, %s1084_s16  ;;  %v558_v51 = vsel %vm67_vm1, %v557_v35, %v556_v44  ;;  %v591_v52 = vrot.slane %v530_v45, 5  ;;  %v524_v53 = vld [vmem:[#allocation2 + $0x5] sm:$0x1]  ;;  %v525_v54 = vld [vmem:[#allocation2 + $0x9] sm:$0x1]  ;;  %s1097_s29 = smov 104  }
  0x32   :  { %v1232_v55 = vsel %vm70_vm2, %v559_v40, %v558_v51  ;;  %v588_v56 = vsel %vm64_vm0, %v587_v46, %v527_v36  ;;  %v526_v57 = vld [vmem:[#allocation2 + $0xd] sm:$0x1]  ;;  %v581_v58 = vrot.slane %v524_v53, 7  ;;  %v583_v61 = vrot.slane %v525_v54, 6  ;;  %v535_v62 = vld [vmem:[#allocation2 + $0x12] sm:$0x1] }
  0x33   :  { %182 = vrot.lane.b32.xlu0 %v1172_v15, %s1084_s16  ;;  %v590_v63 = vsel %vm67_vm1, %v589_v47, %v588_v56  ;;  %v585_v0 = vrot.slane %v526_v57, 5  ;;  %v536_v1 = vld [vmem:[#allocation2 + $0x16] sm:$0x1]  ;;  %v537_v2 = vld [vmem:[#allocation2 + $0x1a] sm:$0x1]  ;;  %s1098_s30 = smov 108  }
  0x34   :  { %v1239_v3 = vsel %vm70_vm2, %v591_v52, %v590_v63  ;;  %v582_v4 = vsel %vm64_vm0, %v581_v58, %v523_v50  ;;  %v538_v6 = vld [vmem:[#allocation2 + $0x1e] sm:$0x1]  ;;  %v613_v8 = vrot.slane %v536_v1, 7  ;;  %v615_v9 = vrot.slane %v537_v2, 6  ;;  %v531_v10 = vld [vmem:[#allocation2 + $0x2] sm:$0x1] }
  0x35   :  { %190 = vrot.lane.b32.xlu1 %v1144_v49, %s1085_s17  ;;  %v584_v11 = vsel %vm67_vm1, %v583_v61, %v582_v4  ;;  %v617_v13 = vrot.slane %v538_v6, 5  ;;  %v532_v14 = vld [vmem:[#allocation2 + $0x6] sm:$0x1]  ;;  %v533_v16 = vld [vmem:[#allocation2 + $0xa] sm:$0x1]  ;;  %vm230_vm3 = vcmask 31744  }
  0x36   :  { %v1245_v17 = vld [vmem:[#allocation2 + $0x14] sm:$0x1]  ;;  %v1248_v18 = vsel %vm70_vm2, %v585_v0, %v584_v11  ;;  %v614_v21 = vsel %vm64_vm0, %v613_v8, %v535_v62  ;;  %v534_v22 = vld [vmem:[#allocation2 + $0xe] sm:$0x1]  ;;  %v607_v23 = vrot.slane %v532_v14, 7  ;;  %v609_v24 = vrot.slane %v533_v16, 6 }
  0x37   :  { %188 = vrot.lane.b32.xlu0 %v1130_v29, %s1085_s17  ;;  %v543_v25 = vld [vmem:[#allocation2 + $0x13] sm:$0x1]  ;;  %v616_v26 = vsel %vm67_vm1, %v615_v9, %v614_v21  ;;  %v611_v27 = vrot.slane %v534_v22, 5  ;;  %v544_v28 = vld [vmem:[#allocation2 + $0x17] sm:$0x1]  ;;  %v324_v56 = vrot.slane %v1245_v17, 7 }
  0x38   :  { %v545_v30 = vld [vmem:[#allocation2 + $0x1b] sm:$0x1]  ;;  %v1254_v32 = vld [vmem:[#allocation2 + $0x18] sm:$0x1]  ;;  %v1257_v33 = vsel %vm70_vm2, %v617_v13, %v616_v26  ;;  %v608_v34 = vsel %vm64_vm0, %v607_v23, %v531_v10  ;;  %v546_v35 = vld [vmem:[#allocation2 + $0x1f] sm:$0x1] }
  0x39   :  { %196 = vrot.lane.b32.xlu1 %v1137_v39, %s1086_s18  ;;  %v639_v36 = vrot.slane %v544_v28, 7  ;;  %v641_v38 = vrot.slane %v545_v30, 6  ;;  %v539_v40 = vld [vmem:[#allocation2 + $0x3] sm:$0x1]  ;;  %v610_v41 = vsel %vm67_vm1, %v609_v24, %v608_v34  ;;  %v643_v42 = vrot.slane %v546_v35, 5  ;;  %s1099_s2 = smov 80  }
  0x3a   :  { %v540_v44 = vld [vmem:[#allocation2 + $0x7] sm:$0x1]  ;;  %v541_v45 = vld [vmem:[#allocation2 + $0xb] sm:$0x1]  ;;  %v1263_v46 = vld [vmem:[#allocation2 + $0x1c] sm:$0x1]  ;;  %v1266_v47 = vsel %vm70_vm2, %v611_v27, %v610_v41 }
  0x3b   :  { %194 = vrot.lane.b32.xlu0 %v1123_v19, %s1086_s18  ;;  %v640_v50 = vsel %vm64_vm0, %v639_v36, %v543_v25  ;;  %v542_v51 = vld [vmem:[#allocation2 + $0xf] sm:$0x1]  ;;  %v633_v52 = vrot.slane %v540_v44, 7  ;;  %v635_v53 = vrot.slane %v541_v45, 6  ;;  %v752_v54 = vld [vmem:[#allocation2] sm:$0x1] }
  0x3c   :  { %v642_v57 = vsel %vm67_vm1, %v641_v38, %v640_v50  ;;  %v637_v58 = vrot.slane %v542_v51, 5  ;;  %v753_v61 = vld [vmem:[#allocation2 + $0x4] sm:$0x1]  ;;  %v754_v62 = vld [vmem:[#allocation2 + $0x8] sm:$0x1]  ;;  %v326_v10 = vrot.slane %v1254_v32, 6 }
  0x3d   :  { %202 = vrot.lane.b32.xlu1 %v1151_v59, %s1087_s19  ;;  %v282_v63 = vld [vmem:[#allocation2 + $0x10] sm:$0x1]  ;;  %v1273_v0 = vld [vmem:[#allocation2 + $0x4] sm:$0x1]  ;;  %v1276_v1 = vsel %vm70_vm2, %v643_v42, %v642_v57  ;;  %v634_v2 = vsel %vm64_vm0, %v633_v52, %v539_v40  ;;  %v755_v4 = vld [vmem:[#allocation2 + $0xc] sm:$0x1] }
  0x3e   :  { %v792_v6 = vrot.slane %v753_v61, 7  ;;  %v794_v8 = vrot.slane %v754_v62, 6  ;;  %v760_v9 = vld [vmem:[#allocation2 + $0x1] sm:$0x1]  ;;  %v636_v11 = vsel %vm67_vm1, %v635_v53, %v634_v2  ;;  %v796_v13 = vrot.slane %v755_v4, 5  ;;  %s1100_s3 = smov 84  }
  0x3f   :  { %200 = vrot.lane.b32.xlu0 %v1158_v5, %s1087_s19  ;;  %v761_v14 = vld [vmem:[#allocation2 + $0x5] sm:$0x1]  ;;  %v762_v16 = vld [vmem:[#allocation2 + $0x9] sm:$0x1]  ;;  %v1283_v17 = vld [vmem:[#allocation2 + $0x8] sm:$0x1]  ;;  %v1286_v21 = vsel %vm70_vm2, %v637_v58, %v636_v11  ;;  %v325_v45 = vsel %vm64_vm0, %v324_v56, %v282_v63 }
  0x40   :  { %v793_v22 = vsel %vm64_vm0, %v792_v6, %v752_v54  ;;  %v763_v23 = vld [vmem:[#allocation2 + $0xd] sm:$0x1]  ;;  %v818_v24 = vrot.slane %v761_v14, 7  ;;  %v820_v25 = vrot.slane %v762_v16, 6  ;;  %v756_v26 = vld [vmem:[#allocation2 + $0x10] sm:$0x1] }
  0x41   :  { %208 = vrot.lane.b32.xlu1 %v1165_v12, %s1087_s19  ;;  %v328_v27 = vrot.slane %v1263_v46, 5  ;;  %v795_v28 = vsel %vm67_vm1, %v794_v8, %v793_v22  ;;  %v822_v30 = vrot.slane %v763_v23, 5  ;;  %v757_v32 = vld [vmem:[#allocation2 + $0x14] sm:$0x1]  ;;  %v758_v34 = vld [vmem:[#allocation2 + $0x18] sm:$0x1] }
  0x42   :  { %v278_v35 = vld [vmem:[#allocation2] sm:$0x1]  ;;  %v1294_v36 = vsel %vm70_vm2, %v796_v13, %v795_v28  ;;  %v819_v38 = vsel %vm64_vm0, %v818_v24, %v760_v9  ;;  %v759_v40 = vld [vmem:[#allocation2 + $0x1c] sm:$0x1]  ;;  %v798_v41 = vrot.slane %v757_v32, 7  ;;  %v800_v42 = vrot.slane %v758_v34, 6 }
  0x43   :  { %206 = vrot.lane.b32.xlu0 %v1172_v15, %s1087_s19  ;;  %v768_v44 = vld [vmem:[#allocation2 + $0x2] sm:$0x1]  ;;  %v318_v50 = vrot.slane %v1273_v0, 7  ;;  %v821_v51 = vsel %vm67_vm1, %v820_v25, %v819_v38  ;;  %v802_v52 = vrot.slane %v759_v40, 5  ;;  %v769_v53 = vld [vmem:[#allocation2 + $0x6] sm:$0x1] }
  0x44   :  { %v770_v54 = vld [vmem:[#allocation2 + $0xa] sm:$0x1]  ;;  %v1301_v57 = vld [vmem:[#allocation2 + $0xc] sm:$0x1]  ;;  %v1304_v58 = vsel %vm70_vm2, %v822_v30, %v821_v51  ;;  %v799_v61 = vsel %vm64_vm0, %v798_v41, %v756_v26  ;;  %v771_v62 = vld [vmem:[#allocation2 + $0xe] sm:$0x1] }
  0x45   :  { %214 = vrot.lane.b32.xlu1 %v1144_v49, %s1088_s20  ;;  %v844_v2 = vrot.slane %v769_v53, 7  ;;  %v846_v4 = vrot.slane %v770_v54, 6  ;;  %v764_v49 = vld [vmem:[#allocation2 + $0x11] sm:$0x1]  ;;  %v320_v56 = vrot.slane %v1283_v17, 6  ;;  %v801_v63 = vsel %vm67_vm1, %v800_v42, %v799_v61  ;;  %s1101_s4 = smov 88  }
  0x46   :  { %v848_v0 = vrot.slane %v771_v62, 5  ;;  %v765_v6 = vld [vmem:[#allocation2 + $0x15] sm:$0x1]  ;;  %v766_v8 = vld [vmem:[#allocation2 + $0x19] sm:$0x1]  ;;  %v1311_v9 = vsel %vm70_vm2, %v802_v52, %v801_v63  ;;  %v319_v17 = vsel %vm64_vm0, %v318_v50, %v278_v35  ;;  %vm236_vm4 = vcmask 97280  }
  0x47   :  { %212 = vrot.lane.b32.xlu0 %v1130_v29, %s1088_s20  ;;  %v845_v11 = vsel %vm64_vm0, %v844_v2, %v768_v44  ;;  %v767_v13 = vld [vmem:[#allocation2 + $0x1d] sm:$0x1]  ;;  %v824_v14 = vrot.slane %v765_v6, 7  ;;  %v826_v16 = vrot.slane %v766_v8, 6  ;;  %v776_v22 = vld [vmem:[#allocation2 + $0x3] sm:$0x1]  ;;  %v327_v29 = vsel %vm67_vm1, %v326_v10, %v325_v45 }
  0x48   :  { %v847_v23 = vsel %vm67_vm1, %v846_v4, %v845_v11  ;;  %v828_v24 = vrot.slane %v767_v13, 5  ;;  %v777_v25 = vld [vmem:[#allocation2 + $0x7] sm:$0x1]  ;;  %v778_v26 = vld [vmem:[#allocation2 + $0xb] sm:$0x1]  ;;  %v321_v54 = vsel %vm67_vm1, %v320_v56, %v319_v17  ;;  %vm233_vm5 = vcmask 64512  }
  0x49   :  { %220 = vrot.lane.b32.xlu1 %v1137_v39, %s1089_s21  ;;  %v1319_v28 = vsel %vm70_vm2, %v848_v0, %v847_v23  ;;  %v825_v30 = vsel %vm64_vm0, %v824_v14, %v764_v49  ;;  %v779_v32 = vld [vmem:[#allocation2 + $0xf] sm:$0x1]  ;;  %v870_v34 = vrot.slane %v777_v25, 7  ;;  %v872_v38 = vrot.slane %v778_v26, 6  ;;  %v772_v40 = vld [vmem:[#allocation2 + $0x12] sm:$0x1] }
  0x4a   :  { %v322_v39 = vrot.slane %v1301_v57, 5  ;;  %v827_v10 = vsel %vm67_vm1, %v826_v16, %v825_v30  ;;  %v874_v35 = vrot.slane %v779_v32, 5  ;;  %v773_v41 = vld [vmem:[#allocation2 + $0x16] sm:$0x1]  ;;  %v774_v42 = vld [vmem:[#allocation2 + $0x1a] sm:$0x1] }
  0x4b   :  { %218 = vrot.lane.b32.xlu0 %v1123_v19, %s1089_s21  ;;  %v1326_v44 = vsel %vm70_vm2, %v828_v24, %v827_v10  ;;  %v871_v45 = vsel %vm64_vm0, %v870_v34, %v776_v22  ;;  %v775_v50 = vld [vmem:[#allocation2 + $0x1e] sm:$0x1]  ;;  %v850_v51 = vrot.slane %v773_v41, 7  ;;  %v852_v52 = vrot.slane %v774_v42, 6  ;;  %v780_v53 = vld [vmem:[#allocation2 + $0x13] sm:$0x1] }
  0x4c   :  { %v329_v19 = vsel %vm70_vm2, %v328_v27, %v327_v29  ;;  %v873_v57 = vsel %vm67_vm1, %v872_v38, %v871_v45  ;;  %v854_v61 = vrot.slane %v775_v50, 5  ;;  %v781_v62 = vld [vmem:[#allocation2 + $0x17] sm:$0x1]  ;;  %v782_v2 = vld [vmem:[#allocation2 + $0x1b] sm:$0x1]  ;;  %v323_v27 = vsel %vm70_vm2, %v322_v39, %v321_v54  ;;  %s1102_s5 = smov 92  }
  0x4d   :  { %226 = vrot.lane.b32.xlu1 %v1151_v59, %s1090_s22  ;;  %v1336_v4 = vsel %vm70_vm2, %v874_v35, %v873_v57  ;;  %v851_v49 = vsel %vm64_vm0, %v850_v51, %v772_v40  ;;  %v783_v63 = vld [vmem:[#allocation2 + $0x1f] sm:$0x1]  ;;  %v876_v0 = vrot.slane %v781_v62, 7  ;;  %v878_v6 = vrot.slane %v782_v2, 6  ;;  %s1103_s6 = smov [#allocation5]  }
  0x4e   :  { %v853_v59 = vsel %vm67_vm1, %v852_v52, %v851_v49  ;;  %v880_v46 = vrot.slane %v783_v63, 5  ;;  %vm239_vm6 = vcmask 130048   ;;  %vm242_vm7 = vcmask 162816   ;;  %s994_s7 = sshll.u32 %s1103_s6, 4  ;;  %s995_s7 = int_to_ptr.vmem [resolvable:$true] %s994_s7 }
  0x4f   :  { %224 = vrot.lane.b32.xlu0 %v1158_v5, %s1090_s22  ;;  %v1343_v56 = vsel %vm70_vm2, %v854_v61, %v853_v59  ;;  %v877_v8 = vsel %vm64_vm0, %v876_v0, %v780_v53  ;;  %vm245_vm8 = vcmask 195584   ;;  %vm248_vm9 = vcmask 228352   ;;  %s1053_s8 = scalar_lea.vmem %s995_s7, 512  ;;  %p1058_p6 = scmp.lt.s32.totalorder %s995_s7, %s995_s7 }
  0x50   :  { %v879_v11 = vsel %vm67_vm1, %v878_v6, %v877_v8  ;;  %vm251_vm10 = vcmask 261120   ;;  %vm254_vm11 = vcmask 293888   ;;  %vm257_vm12 = vcmask 326656   ;;  %p1054_p5 = scmp.ne.s32.totalorder %s995_s7, %s1053_s8  ;;  %p1059_p7 = scmp.lt.s32.totalorder %s1053_s8, %s1053_s8 }
  0x51   :  { %332 = vrot.lane.b32.xlu1 %v329_v19, %s1091_s23  ;;  %v1349_v13 = vsel %vm70_vm2, %v880_v46, %v879_v11  ;;  %vm260_vm13 = vcmask 359424   ;;  %vm263_vm14 = vcmask 392192   ;;  %vm266_vm15 = vcmask 424960  }
  0x52   :  { %vm269_vm0 = vcmask 457728   ;;  %vm272_vm1 = vcmask 490496   ;;  %vm275_vm2 = vcmask 519168   ;;  %p1060_p8 = por %p1059_p7, %p1058_p6 }
  0x53   :  { %330 = vrot.lane.b32.xlu0 %v323_v27, %s1091_s23 }
  0x54   :  { %p1061_p9 = pnand %p1060_p8, %p1054_p5 }
  0x55   :  { %358 = vrot.lane.b32.xlu1 %v1183_v37, %s1092_s24 }
  0x57   :  { %356 = vrot.lane.b32.xlu0 %v1190_v48, %s1092_s24 }
  0x59   :  { %384 = vrot.lane.b32.xlu1 %v1197_v60, %s1093_s25 }
  0x5b   :  { %382 = vrot.lane.b32.xlu0 %v1204_v7, %s1093_s25 }
  0x5d   :  { %410 = vrot.lane.b32.xlu1 %v1211_v20, %s1094_s26 }
  0x5f   :  { %408 = vrot.lane.b32.xlu0 %v1218_v31, %s1094_s26 }
  0x61   :  { %416 = vrot.lane.b32.xlu1 %v329_v19, %s1094_s26 }
  0x63   :  { %414 = vrot.lane.b32.xlu0 %v323_v27, %s1094_s26 }
  0x65   :  { %424 = vrot.lane.b32.xlu1 %v1197_v60, %s1079_s10 }
  0x67   :  { %422 = vrot.lane.b32.xlu0 %v1204_v7, %s1079_s10 }
  0x69   :  { %430 = vrot.lane.b32.xlu1 %v1211_v20, %s1080_s0 }
  0x6b   :  { %428 = vrot.lane.b32.xlu0 %v1218_v31, %s1080_s0 }
  0x6d   :  { %436 = vrot.lane.b32.xlu1 %v329_v19, %s1080_s0 }
  0x6f   :  { %434 = vrot.lane.b32.xlu0 %v323_v27, %s1080_s0 }
  0x71   :  { %442 = vrot.lane.b32.xlu1 %v1183_v37, %s1081_s13 }
  0x73   :  { %440 = vrot.lane.b32.xlu0 %v1190_v48, %s1081_s13 }
  0x75   :  { %448 = vrot.lane.b32.xlu1 %v1197_v60, %s1082_s14 }
  0x77   :  { %446 = vrot.lane.b32.xlu0 %v1204_v7, %s1082_s14 }
  0x79   :  { %454 = vrot.lane.b32.xlu1 %v1211_v20, %s1083_s15 }
  0x7b   :  { %452 = vrot.lane.b32.xlu0 %v1218_v31, %s1083_s15 }
  0x7d   :  { %460 = vrot.lane.b32.xlu1 %v329_v19, %s1083_s15 }
  0x7f   :  { %458 = vrot.lane.b32.xlu0 %v323_v27, %s1083_s15 }
  0x81   :  { %466 = vrot.lane.b32.xlu1 %v1183_v37, %s1084_s16 }
  0x83   :  { %464 = vrot.lane.b32.xlu0 %v1190_v48, %s1084_s16 }
  0x85   :  { %472 = vrot.lane.b32.xlu1 %v1197_v60, %s1085_s17 }
  0x87   :  { %470 = vrot.lane.b32.xlu0 %v1204_v7, %s1085_s17  ;;  %v127_v5 = vpop.permute.xlu1 %126 }
  0x89   :  { %v101_v14 = vpop.permute.xlu0 %100  ;;  %478 = vrot.lane.b32.xlu1 %v1211_v20, %s1086_s18 }
  0x8a   :  { %v231_v42 = vsel %vm230_vm3, %v1172_v15, %v101_v14 }
  0x8b   :  { %476 = vrot.lane.b32.xlu0 %v1218_v31, %s1086_s18  ;;  %v129_v16 = vpop.permute.xlu1 %128 }
  0x8d   :  { %v103_v22 = vpop.permute.xlu0 %102  ;;  %569 = vrot.lane.b32.xlu1 %v1225_v43, %s1095_s27 }
  0x8e   :  { %v232_v35 = vsel %vm230_vm3, %v1165_v12, %v103_v22  ;;  %v234_v12 = vsel %vm233_vm5, %v231_v42, %v127_v5 }
  0x8f   :  { %567 = vrot.lane.b32.xlu0 %v1232_v55, %s1095_s27  ;;  %v155_v60 = vpop.permute.xlu1 %154  ;;  %v235_v45 = vsel %vm233_vm5, %v232_v35, %v129_v16 }
  0x90   :  { %v238_v51 = vsel %vm236_vm4, %v235_v45, %v155_v60 }
  0x91   :  { %v153_v29 = vpop.permute.xlu0 %152  ;;  %595 = vrot.lane.b32.xlu1 %v1239_v3, %s1096_s28 }
  0x92   :  { %v237_v15 = vsel %vm236_vm4, %v234_v12, %v153_v29 }
  0x93   :  { %593 = vrot.lane.b32.xlu0 %v1248_v18, %s1096_s28  ;;  %v161_v7 = vpop.permute.xlu1 %160 }
  0x94   :  { %v241_v52 = vsel %vm239_vm6, %v238_v51, %v161_v7 }
  0x95   :  { %v159_v20 = vpop.permute.xlu0 %158  ;;  %621 = vrot.lane.b32.xlu1 %v1257_v33, %s1097_s29 }
  0x96   :  { %v240_v54 = vsel %vm239_vm6, %v237_v15, %v159_v20 }
  0x97   :  { %619 = vrot.lane.b32.xlu0 %v1266_v47, %s1097_s29  ;;  %v167_v31 = vpop.permute.xlu1 %166 }
  0x98   :  { %v244_v19 = vsel %vm242_vm7, %v241_v52, %v167_v31 }
  0x99   :  { %v165_v17 = vpop.permute.xlu0 %164  ;;  %647 = vrot.lane.b32.xlu1 %v1276_v1, %s1098_s30 }
  0x9a   :  { %v243_v62 = vsel %vm242_vm7, %v240_v54, %v165_v17 }
  0x9b   :  { %645 = vrot.lane.b32.xlu0 %v1286_v21, %s1098_s30  ;;  %v173_v23 = vpop.permute.xlu1 %172 }
  0x9c   :  { %v247_v57 = vsel %vm245_vm8, %v244_v19, %v173_v23 }
  0x9d   :  { %v171_v24 = vpop.permute.xlu0 %170  ;;  %653 = vrot.lane.b32.xlu1 %v1225_v43, %s1098_s30 }
  0x9e   :  { %v246_v49 = vsel %vm245_vm8, %v243_v62, %v171_v24 }
  0x9f   :  { %651 = vrot.lane.b32.xlu0 %v1232_v55, %s1098_s30  ;;  %v179_v25 = vpop.permute.xlu1 %178 }
  0xa0   :  { %v250_v2 = vsel %vm248_vm9, %v247_v57, %v179_v25 }
  0xa1   :  { %v177_v26 = vpop.permute.xlu0 %176  ;;  %659 = vrot.lane.b32.xlu1 %v1239_v3, %s1091_s23 }
  0xa2   :  { %v249_v6 = vsel %vm248_vm9, %v246_v49, %v177_v26 }
  0xa3   :  { %657 = vrot.lane.b32.xlu0 %v1248_v18, %s1091_s23  ;;  %v185_v30 = vpop.permute.xlu1 %184 }
  0xa4   :  { %v253_v63 = vsel %vm251_vm10, %v250_v2, %v185_v30 }
  0xa5   :  { %v183_v32 = vpop.permute.xlu0 %182  ;;  %665 = vrot.lane.b32.xlu1 %v1257_v33, %s1092_s24 }
  0xa6   :  { %v252_v46 = vsel %vm251_vm10, %v249_v6, %v183_v32 }
  0xa7   :  { %663 = vrot.lane.b32.xlu0 %v1266_v47, %s1092_s24  ;;  %v191_v34 = vpop.permute.xlu1 %190 }
  0xa8   :  { %v256_v59 = vsel %vm254_vm11, %v253_v63, %v191_v34 }
  0xa9   :  { %v189_v38 = vpop.permute.xlu0 %188  ;;  %671 = vrot.lane.b32.xlu1 %v1276_v1, %s1093_s25 }
  0xaa   :  { %v255_v11 = vsel %vm254_vm11, %v252_v46, %v189_v38 }
  0xab   :  { %669 = vrot.lane.b32.xlu0 %v1286_v21, %s1093_s25  ;;  %v197_v40 = vpop.permute.xlu1 %196 }
  0xac   :  { %v259_v27 = vsel %vm257_vm12, %v256_v59, %v197_v40 }
  0xad   :  { %v195_v39 = vpop.permute.xlu0 %194  ;;  %677 = vrot.lane.b32.xlu1 %v1225_v43, %s1093_s25 }
  0xae   :  { %v258_v14 = vsel %vm257_vm12, %v255_v11, %v195_v39 }
  0xaf   :  { %675 = vrot.lane.b32.xlu0 %v1232_v55, %s1093_s25  ;;  %v203_v10 = vpop.permute.xlu1 %202 }
  0xb0   :  { %v262_v5 = vsel %vm260_vm13, %v259_v27, %v203_v10 }
  0xb1   :  { %v201_v41 = vpop.permute.xlu0 %200  ;;  %683 = vrot.lane.b32.xlu1 %v1239_v3, %s1094_s26 }
  0xb2   :  { %v261_v60 = vsel %vm260_vm13, %v258_v14, %v201_v41 }
  0xb3   :  { %681 = vrot.lane.b32.xlu0 %v1248_v18, %s1094_s26  ;;  %v209_v50 = vpop.permute.xlu1 %208 }
  0xb4   :  { %v265_v16 = vsel %vm263_vm14, %v262_v5, %v209_v50 }
  0xb5   :  { %v207_v53 = vpop.permute.xlu0 %206  ;;  %691 = vrot.lane.b32.xlu1 %v1276_v1, %s1079_s10 }
  0xb7   :  { %689 = vrot.lane.b32.xlu0 %v1286_v21, %s1079_s10  ;;  %v215_v61 = vpop.permute.xlu1 %214 }
  0xb8   :  { %v268_v29 = vsel %vm266_vm15, %v265_v16, %v215_v61 }
  0xb9   :  { %v213_v0 = vpop.permute.xlu0 %212  ;;  %804 = vrot.lane.b32.xlu1 %v1294_v36, %s1099_s2 }
  0xbb   :  { %695 = vrot.lane.b32.xlu0 %v1232_v55, %s1079_s10  ;;  %v221_v8 = vpop.permute.xlu1 %220  ;;  %v264_v55 = vsel %vm263_vm14, %v261_v60, %v207_v53 }
  0xbc   :  { %v271_v7 = vsel %vm269_vm0, %v268_v29, %v221_v8  ;;  %v267_v31 = vsel %vm266_vm15, %v264_v55, %v213_v0 }
  0xbd   :  { %v219_v22 = vpop.permute.xlu0 %218  ;;  %830 = vrot.lane.b32.xlu1 %v1304_v58, %s1100_s3 }
  0xbe   :  { %v270_v23 = vsel %vm269_vm0, %v267_v31, %v219_v22 }
  0xbf   :  { %806 = vrot.lane.b32.xlu0 %v1311_v9, %s1099_s2  ;;  %v227_v20 = vpop.permute.xlu1 %226 }
  0xc0   :  { %v274_v17 = vsel %vm272_vm1, %v271_v7, %v227_v20 }
  0xc1   :  { %277 = vst.msk [vmem:[#allocation5 + $0x10] sm:$0xf] %vm275_vm2, %v274_v17  ;;  %v225_v24 = vpop.permute.xlu0 %224  ;;  %856 = vrot.lane.b32.xlu1 %v1319_v28, %s1101_s4 }
  0xc2   :  { %v273_v25 = vsel %vm272_vm1, %v270_v23, %v225_v24 }
  0xc3   :  { %276 = vst.msk [vmem:[#allocation5] sm:$0xf] %vm275_vm2, %v273_v25  ;;  %832 = vrot.lane.b32.xlu0 %v1326_v44, %s1100_s3  ;;  %v333_v26 = vpop.permute.xlu1 %332 }
  0xc5   :  { %v331_v30 = vpop.permute.xlu0 %330  ;;  %882 = vrot.lane.b32.xlu1 %v1336_v4, %s1102_s5 }
  0xc7   :  { %858 = vrot.lane.b32.xlu0 %v1343_v56, %s1101_s4  ;;  %v359_v32 = vpop.permute.xlu1 %358 }
  0xc8   :  { %v483_v61 = vsel %vm230_vm3, %v333_v26, %v359_v32 }
  0xc9   :  { %v357_v34 = vpop.permute.xlu0 %356  ;;  %888 = vrot.lane.b32.xlu1 %v1294_v36, %s1102_s5 }
  0xca   :  { %v482_v49 = vsel %vm230_vm3, %v331_v30, %v357_v34 }
  0xcb   :  { %884 = vrot.lane.b32.xlu0 %v1349_v13, %s1102_s5  ;;  %v385_v38 = vpop.permute.xlu1 %384 }
  0xcc   :  { %v485_v62 = vsel %vm233_vm5, %v483_v61, %v385_v38 }
  0xcd   :  { %v383_v40 = vpop.permute.xlu0 %382  ;;  %894 = vrot.lane.b32.xlu1 %v1304_v58, %s1095_s27 }
  0xce   :  { %v484_v0 = vsel %vm233_vm5, %v482_v49, %v383_v40 }
  0xcf   :  { %890 = vrot.lane.b32.xlu0 %v1311_v9, %s1102_s5  ;;  %v411_v39 = vpop.permute.xlu1 %410 }
  0xd0   :  { %v487_v63 = vsel %vm236_vm4, %v485_v62, %v411_v39 }
  0xd1   :  { %v409_v10 = vpop.permute.xlu0 %408  ;;  %900 = vrot.lane.b32.xlu1 %v1319_v28, %s1096_s28 }
  0xd2   :  { %v486_v59 = vsel %vm236_vm4, %v484_v0, %v409_v10 }
  0xd3   :  { %896 = vrot.lane.b32.xlu0 %v1326_v44, %s1095_s27  ;;  %v417_v35 = vpop.permute.xlu1 %416 }
  0xd5   :  { %v415_v41 = vpop.permute.xlu0 %414  ;;  %906 = vrot.lane.b32.xlu1 %v1336_v4, %s1097_s29 }
  0xd6   :  { %v488_v46 = vsel %vm239_vm6, %v486_v59, %v415_v41 }
  0xd7   :  { %902 = vrot.lane.b32.xlu0 %v1343_v56, %s1096_s28  ;;  %v425_v42 = vpop.permute.xlu1 %424 }
  0xd9   :  { %v423_v45 = vpop.permute.xlu0 %422  ;;  %912 = vrot.lane.b32.xlu1 %v1294_v36, %s1097_s29 }
  0xdb   :  { %908 = vrot.lane.b32.xlu0 %v1349_v13, %s1097_s29  ;;  %v431_v50 = vpop.permute.xlu1 %430 }
  0xdd   :  { %v429_v51 = vpop.permute.xlu0 %428  ;;  %918 = vrot.lane.b32.xlu1 %v1304_v58, %s1098_s30 }
  0xdf   :  { %914 = vrot.lane.b32.xlu0 %v1311_v9, %s1097_s29  ;;  %v437_v12 = vpop.permute.xlu1 %436 }
  0xe1   :  { %v435_v52 = vpop.permute.xlu0 %434  ;;  %924 = vrot.lane.b32.xlu1 %v1319_v28, %s1091_s23 }
  0xe3   :  { %920 = vrot.lane.b32.xlu0 %v1326_v44, %s1098_s30  ;;  %v443_v53 = vpop.permute.xlu1 %442 }
  0xe5   :  { %v441_v15 = vpop.permute.xlu0 %440  ;;  %930 = vrot.lane.b32.xlu1 %v1336_v4, %s1092_s24 }
  0xe7   :  { %926 = vrot.lane.b32.xlu0 %v1343_v56, %s1091_s23  ;;  %v449_v19 = vpop.permute.xlu1 %448 }
  0xe9   :  { %v447_v54 = vpop.permute.xlu0 %446  ;;  %697 = vrot.lane.b32.xlu1 %v1225_v43, %s1079_s10  ;;  %v489_v43 = vsel %vm239_vm6, %v487_v63, %v417_v35 }
  0xeb   :  { %932 = vrot.lane.b32.xlu0 %v1349_v13, %s1092_s24  ;;  %v455_v57 = vpop.permute.xlu1 %454 }
  0xed   :  { %v453_v2 = vpop.permute.xlu0 %452  ;;  %938 = vrot.lane.b32.xlu1 %v1311_v9, %s1092_s24  ;;  %v491_v9 = vsel %vm242_vm7, %v489_v43, %v1183_v37 }
  0xee   :  { %v493_v8 = vsel %vm245_vm8, %v491_v9, %v425_v42 }
  0xef   :  { %936 = vrot.lane.b32.xlu0 %v1294_v36, %s1092_s24  ;;  %v461_v6 = vpop.permute.xlu1 %460  ;;  %v490_v36 = vsel %vm242_vm7, %v488_v46, %v1190_v48  ;;  %v495_v5 = vsel %vm248_vm9, %v493_v8, %v431_v50 }
  0xf0   :  { %v492_v14 = vsel %vm245_vm8, %v490_v36, %v423_v45  ;;  %v497_v16 = vsel %vm251_vm10, %v495_v5, %v437_v12 }
  0xf1   :  { %v459_v27 = vpop.permute.xlu0 %458  ;;  %703 = vrot.lane.b32.xlu1 %v1239_v3, %s1080_s0  ;;  %v494_v37 = vsel %vm248_vm9, %v492_v14, %v429_v51  ;;  %v499_v3 = vsel %vm254_vm11, %v497_v16, %v443_v53 }
  0xf2   :  { %v501_v60 = vsel %vm257_vm12, %v499_v3, %v449_v19 }
  0xf3   :  { %701 = vrot.lane.b32.xlu0 %v1248_v18, %s1080_s0  ;;  %v467_v11 = vpop.permute.xlu1 %466  ;;  %v496_v18 = vsel %vm251_vm10, %v494_v37, %v435_v52  ;;  %v503_v55 = vsel %vm260_vm13, %v501_v60, %v455_v57 }
  0xf4   :  { %v498_v29 = vsel %vm254_vm11, %v496_v18, %v441_v15 }
  0xf5   :  { %v465_v22 = vpop.permute.xlu0 %464  ;;  %944 = vrot.lane.b32.xlu1 %v1326_v44, %s1093_s25  ;;  %v500_v7 = vsel %vm257_vm12, %v498_v29, %v447_v54  ;;  %v505_v44 = vsel %vm263_vm14, %v503_v55, %v461_v6 }
  0xf6   :  { %v502_v31 = vsel %vm260_vm13, %v500_v7, %v453_v2  ;;  %v507_v17 = vsel %vm266_vm15, %v505_v44, %v467_v11 }
  0xf7   :  { %942 = vrot.lane.b32.xlu0 %v1304_v58, %s1093_s25  ;;  %v473_v48 = vpop.permute.xlu1 %472  ;;  %v504_v23 = vsel %vm263_vm14, %v502_v31, %v459_v27 }
  0xf8   :  { %v509_v58 = vsel %vm269_vm0, %v507_v17, %v473_v48  ;;  %v506_v25 = vsel %vm266_vm15, %v504_v23, %v465_v22 }
  0xf9   :  { %v471_v20 = vpop.permute.xlu0 %470  ;;  %709 = vrot.lane.b32.xlu1 %v1257_v33, %s1081_s13 }
  0xfa   :  { %v508_v30 = vsel %vm269_vm0, %v506_v25, %v471_v20 }
  0xfb   :  { %707 = vrot.lane.b32.xlu0 %v1266_v47, %s1081_s13  ;;  %v479_v24 = vpop.permute.xlu1 %478 }
  0xfc   :  { %v511_v26 = vsel %vm272_vm1, %v509_v58, %v479_v24 }
  0xfd   :  { %514 = vst.msk [vmem:[#allocation5 + $0x14] sm:$0xf] %vm275_vm2, %v511_v26  ;;  %v477_v32 = vpop.permute.xlu0 %476  ;;  %950 = vrot.lane.b32.xlu1 %v1343_v56, %s1094_s26 }
  0xfe   :  { %v510_v34 = vsel %vm272_vm1, %v508_v30, %v477_v32 }
  0xff   :  { %513 = vst.msk [vmem:[#allocation5 + $0x4] sm:$0xf] %vm275_vm2, %v510_v34  ;;  %948 = vrot.lane.b32.xlu0 %v1319_v28, %s1094_s26  ;;  %v570_v38 = vpop.permute.xlu1 %569 }
 0x101   :  { %v568_v40 = vpop.permute.xlu0 %567  ;;  %715 = vrot.lane.b32.xlu1 %v1276_v1, %s1082_s14 }
 0x103   :  { %713 = vrot.lane.b32.xlu0 %v1286_v21, %s1082_s14  ;;  %v596_v39 = vpop.permute.xlu1 %595 }
 0x104   :  { %v720_v10 = vsel %vm230_vm3, %v570_v38, %v596_v39 }
 0x105   :  { %v594_v35 = vpop.permute.xlu0 %593 }
 0x106   :  { %v719_v56 = vsel %vm230_vm3, %v568_v40, %v594_v35 }
 0x107   :  { %v622_v41 = vpop.permute.xlu1 %621 }
 0x108   :  { %v722_v42 = vsel %vm233_vm5, %v720_v10, %v622_v41 }
 0x109   :  { %v620_v45 = vpop.permute.xlu0 %619 }
 0x10a   :  { %v721_v28 = vsel %vm233_vm5, %v719_v56, %v620_v45 }
 0x10b   :  { %v648_v50 = vpop.permute.xlu1 %647 }
 0x10c   :  { %v724_v51 = vsel %vm236_vm4, %v722_v42, %v648_v50 }
 0x10d   :  { %v646_v12 = vpop.permute.xlu0 %645 }
 0x10e   :  { %v723_v1 = vsel %vm236_vm4, %v721_v28, %v646_v12 }
 0x10f   :  { %v654_v52 = vpop.permute.xlu1 %653 }
 0x110   :  { %v726_v21 = vsel %vm239_vm6, %v724_v51, %v654_v52 }
 0x111   :  { %v652_v53 = vpop.permute.xlu0 %651 }
 0x112   :  { %v725_v15 = vsel %vm239_vm6, %v723_v1, %v652_v53 }
 0x113   :  { %v660_v19 = vpop.permute.xlu1 %659 }
 0x114   :  { %v728_v54 = vsel %vm242_vm7, %v726_v21, %v660_v19 }
 0x115   :  { %v658_v57 = vpop.permute.xlu0 %657 }
 0x116   :  { %v727_v61 = vsel %vm242_vm7, %v725_v15, %v658_v57 }
 0x117   :  { %v666_v62 = vpop.permute.xlu1 %665 }
 0x118   :  { %v730_v2 = vsel %vm245_vm8, %v728_v54, %v666_v62 }
 0x119   :  { %v664_v49 = vpop.permute.xlu0 %663 }
 0x11a   :  { %v729_v63 = vsel %vm245_vm8, %v727_v61, %v664_v49 }
 0x11b   :  { %v672_v0 = vpop.permute.xlu1 %671 }
 0x11c   :  { %v732_v43 = vsel %vm248_vm9, %v730_v2, %v672_v0 }
 0x11d   :  { %v670_v6 = vpop.permute.xlu0 %669 }
 0x11e   :  { %v731_v59 = vsel %vm248_vm9, %v729_v63, %v670_v6 }
 0x11f   :  { %v678_v46 = vpop.permute.xlu1 %677 }
 0x120   :  { %v734_v27 = vsel %vm251_vm10, %v732_v43, %v678_v46 }
 0x121   :  { %v676_v9 = vpop.permute.xlu0 %675 }
 0x122   :  { %v733_v8 = vsel %vm251_vm10, %v731_v59, %v676_v9 }
 0x123   :  { %v684_v11 = vpop.permute.xlu1 %683 }
 0x124   :  { %v736_v36 = vsel %vm254_vm11, %v734_v27, %v684_v11 }
 0x125   :  { %v682_v5 = vpop.permute.xlu0 %681  ;;  %v738_v16 = vsel %vm257_vm12, %v736_v36, %v1257_v33 }
 0x126   :  { %v735_v14 = vsel %vm254_vm11, %v733_v8, %v682_v5 }
 0x127   :  { %v692_v22 = vpop.permute.xlu1 %691  ;;  %v737_v3 = vsel %vm257_vm12, %v735_v14, %v1266_v47 }
 0x128   :  { %v1601_v37 = vsel %vm260_vm13, %v738_v16, %v692_v22 }
 0x129   :  { %v690_v18 = vpop.permute.xlu0 %689 }
 0x12a   :  { %v739_v60 = vsel %vm260_vm13, %v737_v3, %v690_v18 }
 0x12b   :  { %v805_v48 = vpop.permute.xlu1 %804 }
 0x12d   :  { %v696_v29 = vpop.permute.xlu0 %695 }
 0x12e   :  { %v1607_v55 = vsel %vm263_vm14, %v739_v60, %v696_v29 }
 0x12f   :  { %v831_v7 = vpop.permute.xlu1 %830 }
 0x130   :  { %v956_v52 = vsel %vm230_vm3, %v805_v48, %v831_v7 }
 0x131   :  { %v807_v44 = vpop.permute.xlu0 %806 }
 0x133   :  { %v857_v20 = vpop.permute.xlu1 %856 }
 0x134   :  { %v958_v15 = vsel %vm233_vm5, %v956_v52, %v857_v20 }
 0x135   :  { %v833_v31 = vpop.permute.xlu0 %832 }
 0x136   :  { %v957_v51 = vsel %vm230_vm3, %v807_v44, %v833_v31 }
 0x137   :  { %v883_v33 = vpop.permute.xlu1 %882 }
 0x138   :  { %v960_v54 = vsel %vm236_vm4, %v958_v15, %v883_v33 }
 0x139   :  { %v859_v17 = vpop.permute.xlu0 %858 }
 0x13a   :  { %v959_v1 = vsel %vm233_vm5, %v957_v51, %v859_v17 }
 0x13b   :  { %v889_v23 = vpop.permute.xlu1 %888 }
 0x13c   :  { %v962_v62 = vsel %vm239_vm6, %v960_v54, %v889_v23 }
 0x13d   :  { %v885_v58 = vpop.permute.xlu0 %884 }
 0x13e   :  { %v961_v21 = vsel %vm236_vm4, %v959_v1, %v885_v58 }
 0x13f   :  { %v895_v24 = vpop.permute.xlu1 %894 }
 0x140   :  { %v964_v49 = vsel %vm242_vm7, %v962_v62, %v895_v24 }
 0x141   :  { %v891_v25 = vpop.permute.xlu0 %890 }
 0x142   :  { %v963_v19 = vsel %vm239_vm6, %v961_v21, %v891_v25 }
 0x143   :  { %v901_v26 = vpop.permute.xlu1 %900 }
 0x144   :  { %v966_v43 = vsel %vm245_vm8, %v964_v49, %v901_v26 }
 0x145   :  { %v897_v47 = vpop.permute.xlu0 %896 }
 0x146   :  { %v965_v57 = vsel %vm242_vm7, %v963_v19, %v897_v47 }
 0x147   :  { %v907_v30 = vpop.permute.xlu1 %906 }
 0x148   :  { %v968_v59 = vsel %vm248_vm9, %v966_v43, %v907_v30 }
 0x149   :  { %v903_v32 = vpop.permute.xlu0 %902 }
 0x14a   :  { %v967_v2 = vsel %vm245_vm8, %v965_v57, %v903_v32 }
 0x14b   :  { %v913_v34 = vpop.permute.xlu1 %912 }
 0x14c   :  { %v970_v9 = vsel %vm251_vm10, %v968_v59, %v913_v34 }
 0x14d   :  { %v909_v38 = vpop.permute.xlu0 %908 }
 0x14e   :  { %v969_v63 = vsel %vm248_vm9, %v967_v2, %v909_v38 }
 0x14f   :  { %v919_v40 = vpop.permute.xlu1 %918 }
 0x150   :  { %v972_v11 = vsel %vm254_vm11, %v970_v9, %v919_v40 }
 0x151   :  { %v915_v39 = vpop.permute.xlu0 %914 }
 0x152   :  { %v971_v6 = vsel %vm251_vm10, %v969_v63, %v915_v39 }
 0x153   :  { %v925_v10 = vpop.permute.xlu1 %924 }
 0x154   :  { %v974_v14 = vsel %vm257_vm12, %v972_v11, %v925_v10 }
 0x155   :  { %v921_v35 = vpop.permute.xlu0 %920 }
 0x156   :  { %v973_v46 = vsel %vm254_vm11, %v971_v6, %v921_v35 }
 0x157   :  { %v931_v56 = vpop.permute.xlu1 %930 }
 0x158   :  { %v976_v22 = vsel %vm260_vm13, %v974_v14, %v931_v56 }
 0x159   :  { %v927_v41 = vpop.permute.xlu0 %926 }
 0x15a   :  { %v975_v8 = vsel %vm257_vm12, %v973_v46, %v927_v41 }
 0x15b   :  { %v698_v42 = vpop.permute.xlu1 %697 }
 0x15c   :  { %v742_v29 = vsel %vm263_vm14, %v1601_v37, %v698_v42 }
 0x15d   :  { %v933_v45 = vpop.permute.xlu0 %932 }
 0x15e   :  { %v977_v36 = vsel %vm260_vm13, %v975_v8, %v933_v45 }
 0x15f   :  { %v939_v28 = vpop.permute.xlu1 %938 }
 0x160   :  { %v979_v16 = vsel %vm263_vm14, %v977_v36, %v939_v28 }
 0x161   :  { %v937_v50 = vpop.permute.xlu0 %936 }
 0x162   :  { %v978_v60 = vsel %vm263_vm14, %v976_v22, %v937_v50 }
 0x163   :  { %v704_v12 = vpop.permute.xlu1 %703 }
 0x164   :  { %v744_v31 = vsel %vm266_vm15, %v742_v29, %v704_v12 }
 0x165   :  { %v702_v53 = vpop.permute.xlu0 %701 }
 0x166   :  { %v743_v58 = vsel %vm266_vm15, %v1607_v55, %v702_v53 }
 0x167   :  { %v945_v61 = vpop.permute.xlu1 %944 }
 0x168   :  { %v981_v3 = vsel %vm266_vm15, %v979_v16, %v945_v61 }
 0x169   :  { %v943_v0 = vpop.permute.xlu0 %942 }
 0x16a   :  { %v980_v7 = vsel %vm266_vm15, %v978_v60, %v943_v0 }
 0x16b   :  { %v710_v27 = vpop.permute.xlu1 %709 }
 0x16c   :  { %v746_v17 = vsel %vm269_vm0, %v744_v31, %v710_v27 }
 0x16d   :  { %v708_v5 = vpop.permute.xlu0 %707 }
 0x16e   :  { %v745_v24 = vsel %vm269_vm0, %v743_v58, %v708_v5 }
 0x16f   :  { %v951_v18 = vpop.permute.xlu1 %950 }
 0x170   :  { %v983_v48 = vsel %vm269_vm0, %v981_v3, %v951_v18 }
 0x171   :  { %v985_v44 = vsel %vm272_vm1, %v983_v48, %v1349_v13  ;;  %v949_v20 = vpop.permute.xlu0 %948 }
 0x172   :  { %988 = vst.msk [vmem:[#allocation5 + $0x1c] sm:$0xf] %vm275_vm2, %v985_v44  ;;  %v982_v33 = vsel %vm269_vm0, %v980_v7, %v949_v20 }
 0x173   :  { %v984_v23 = vsel %vm272_vm1, %v982_v33, %v1336_v4  ;;  %v716_v37 = vpop.permute.xlu1 %715 }
 0x174   :  { %987 = vst.msk [vmem:[#allocation5 + $0xc] sm:$0xf] %vm275_vm2, %v984_v23  ;;  %v748_v13 = vsel %vm272_vm1, %v746_v17, %v716_v37 }
 0x175   :  { %751 = vst.msk [vmem:[#allocation5 + $0x18] sm:$0xf] %vm275_vm2, %v748_v13  ;;  %v714_v25 = vpop.permute.xlu0 %713 }
 0x176   :  { %v747_v26 = vsel %vm272_vm1, %v745_v24, %v714_v25 }
 0x177   :  { %750 = vst.msk [vmem:[#allocation5 + $0x8] sm:$0xf] %vm275_vm2, %v747_v26 }
 0x178   :  { %1064 = shalt.err (!%p1061_p9)
}
 0x179   :  { %1000 = dma.vmem_to_hbm [thread:$0]  %s995_s7, 512, %s1661_s1, [#allocation4], %s1078_s9, %s1078_s9, %s1079_s10  }
 0x17a   :  { %1075 = dma.done.wait [#allocation4], 512  }
 0x17b   :  { %1076 = vsyncadd [#allocation4], 4294966784 }
 0x17c   :  { %1004 = vsyncpa [#allocation3], 1 }
 0x17d   :  { %1005 = vsyncpa [#allocation4], 1 }

</bundles_post_ra>
